<compile_context>
chip_gen: v7x
topology: tpu7x:2x2x1
jax: 0.10.0
libtpu: 0.0.40
codegen_flags: <defaults>
</compile_context>

<pallas_src>
import jax
import jax.numpy as jnp
from jax import lax
from jax.experimental import pallas as pl
from jax.experimental.pallas import tpu as pltpu

# ---------------- configuration (small synthetic shapes) ----------------
SEQ_H, SEQ_W = 2, 4
SEQ_LEN = SEQ_H * SEQ_W          # 8
D_MODEL = 32
NUM_LAYERS = 2
DIM_FF = 64
NUM_Q = 2                        # probe batch (tgt / stored "memory")
NUM_K = 3                        # gallery batch (features / memory)
BN_EPS = 1e-5


# -------- param-slab layout: every piece starts on an 8-row boundary, 128 lanes --------
def _round8(n):
    return ((n + 7) // 8) * 8


def _slab_layout(S, D, Q, K):
    rows = {}
    off = 0
    for name, n in (('w1', D), ('b1', 1), ('gA', K * S), ('gB', Q * S),
                    ('w2', S), ('vec', 4)):
        rows[name] = off
        off += _round8(n)
    rows['rows'] = off
    return rows


def _layers_per_step(num_layers):
    """Layer-axis placement: parallel grid on multi-TensorCore chips, folded otherwise."""
    try:
        kind = jax.devices()[0].device_kind.lower().replace(" ", "")
    except Exception:
        kind = ""
    multi_tc = any(tag in kind for tag in ("v7", "tpu7", "v4", "v5p"))
    return 1 if multi_tc else num_layers


# ------------- fused decoder-stack kernel (one grid step = lps layers) -------------
def _make_stack_kernel(*, S, D, F, Q, K, lps, rows):
    QS, KS = Q * S, K * S
    f32 = jnp.float32
    dn = (((1,), (1,)), ((), ()))        # contract dim 1 of both operands

    def lane_pack(pieces, width=128):
        used = sum(p.shape[1] for p in pieces)
        if used < width:
            pieces = list(pieces) + [jnp.zeros((pieces[0].shape[0], width - used), f32)]
        return jnp.concatenate(pieces, axis=1) if len(pieces) > 1 else pieces[0]

    def kernel(tgt_ref, mem_ref, par_ref, out_ref):
        for li in range(lps):            # static unroll over the layers in this grid step
            # ---- carve the packed parameter slab with static slices (no extra DMAs) ----
            w1 = par_ref[li, rows['w1']:rows['w1'] + D, 0:D]      # (D, D): y = x @ w1 + b1
            b1 = par_ref[li, rows['b1']:rows['b1'] + 1, 0:D]      # (1, D)
            gA = par_ref[li, rows['gA']:rows['gA'] + KS, 0:QS]    # (K*S, Q*S) sigmoid gate
            gB = par_ref[li, rows['gB']:rows['gB'] + QS, 0:KS]    # (Q*S, K*S)
            w2 = par_ref[li, rows['w2']:rows['w2'] + S, 0:F]      # (S, F)  (bn1 folded)
            v = rows['vec']
            b2 = par_ref[li, v + 0:v + 1, 0:F]
            bn2s = par_ref[li, v + 1:v + 2, 0:F]
            bn2b = par_ref[li, v + 2:v + 3, 0:F]
            w3 = par_ref[li, v + 3:v + 4, 0:F]                    # (1, F)  (bn3 scale folded)

            # ---- shared fc1 for probe (query) and gallery (key): two MXU passes ----
            q_flat = jnp.dot(tgt_ref[li], w1, preferred_element_type=f32) + b1   # (Q*S, D)
            k_flat = jnp.dot(mem_ref[li], w1, preferred_element_type=f32) + b1   # (K*S, D)

            # ---- two batched score panels (one dot each), gated by pre-tiled sigmoid ----
            # sc_a[k*S+s, q*S+t] = sc_b[q*S+t, k*S+s] = score[q, k, s, t]
            sc_a = lax.dot_general(k_flat, q_flat, dn, preferred_element_type=f32) * gA
            sc_b = lax.dot_general(q_flat, k_flat, dn, preferred_element_type=f32) * gB

            # ---- prob_score / index_in_gal: max + first-argmax over s (per k-block) ----
            # ---- gal_score  / index_in_prob: max + first-argmax over t (per q-block) ----
            idx_a = lax.broadcasted_iota(jnp.int32, (S, QS), 0)
            idx_b = lax.broadcasted_iota(jnp.int32, (S, KS), 0)
            prob_p, ig_p, gal_p, ip_p = [], [], [], []
            for kk in range(K):
                blk = sc_a[kk * S:(kk + 1) * S, :]                      # (S, Q*S)
                m = jnp.max(blk, axis=0, keepdims=True)
                prob_p.append(m)
                ig_p.append(jnp.min(jnp.where(blk == m, idx_a, S), axis=0, keepdims=True))
            for qq in range(Q):
                blk = sc_b[qq * S:(qq + 1) * S, :]                      # (S, K*S)
                m = jnp.max(blk, axis=0, keepdims=True)
                gal_p.append(m)
                ip_p.append(jnp.min(jnp.where(blk == m, idx_b, S), axis=0, keepdims=True))
            prob = jnp.concatenate(prob_p, axis=0)                      # (K, Q*S)  [k, q*S+t]
            ig = jnp.concatenate(ig_p, axis=0).astype(f32)              # (K, Q*S)
            gal = jnp.concatenate(gal_p, axis=0)                        # (Q, K*S)  [q, k*S+s]
            ip = jnp.concatenate(ip_p, axis=0).astype(f32)              # (Q, K*S)

            # ---- MLP head: bn1 folded into w2/b2, bn2 as scale/shift, relu, fc3 ----
            # Both branches in ONE matmul:
            #   rows [0, Q*K)      : prob rows, pair order q*K + k
            #   rows [Q*K, 2*Q*K)  : gal  rows, pair order k*Q + q
            x_all = jnp.concatenate(
                [prob[:, qq * S:(qq + 1) * S] for qq in range(Q)]
                + [gal[:, kk * S:(kk + 1) * S] for kk in range(K)], axis=0)   # (2*Q*K, S)
            h = jnp.dot(x_all, w2, preferred_element_type=f32) + b2
            h = jnp.maximum(h * bn2s + bn2b, 0.0)                             # (2*Q*K, F)
            z = lax.dot_general(w3, h, dn, preferred_element_type=f32)        # (1, 2*Q*K)

            # ---- pack everything into one lane-dense (8, 128) block: single store ----
            # rows 0..K-1   : [prob | index_in_gal | 0]   (lanes 0 .. 2*Q*S-1)
            # rows K..K+Q-1 : [gal  | index_in_prob | 0]  (lanes 0 .. 2*K*S-1)
            # row  K+Q      : [fc3(prob rows) | fc3(gal rows) | 0]
            row_a = lane_pack([prob, ig])                                      # (K, 128)
            row_b = lane_pack([gal, ip])                                       # (Q, 128)
            row_c = lane_pack([z])                                             # (1, 128)
            parts = [row_a, row_b, row_c]
            n_fill = 8 - (K + Q + 1)
            if n_fill > 0:
                parts.append(jnp.zeros((n_fill, 128), f32))
            out_ref[li] = jnp.concatenate(parts, axis=0)                       # (8, 128)

    return kernel


def fused_decoder_layers(tgt_l, mem_l, slabs, *, seq_len, dim_ff, rows):
    L, QS, D = tgt_l.shape
    KS = mem_l.shape[1]
    ROWS = slabs.shape[1]
    S, F = seq_len, dim_ff
    Q, K = QS // S, KS // S
    # the packed (8,128) output layout only holds these toy sizes; re-derive if scaled up
    assert K + Q + 1 <= 8 and 2 * QS <= 128 and 2 * KS <= 128 and 2 * Q * K <= 128

    lps = _layers_per_step(L)
    if L % lps != 0:
        lps = 1
    kernel = _make_stack_kernel(S=S, D=D, F=F, Q=Q, K=K, lps=lps, rows=rows)

    return pl.pallas_call(
        kernel,
        out_shape=jax.ShapeDtypeStruct((L, 8, 128), jnp.float32),
        grid=(L // lps,),
        in_specs=[
            pl.BlockSpec((lps, QS, D), lambda l: (l, 0, 0)),
            pl.BlockSpec((lps, KS, D), lambda l: (l, 0, 0)),
            pl.BlockSpec((lps, ROWS, 128), lambda l: (l, 0, 0)),
        ],
        out_specs=pl.BlockSpec((lps, 8, 128), lambda l: (l, 0, 0)),
        compiler_params=pltpu.CompilerParams(dimension_semantics=("parallel",)),
    )(tgt_l, mem_l, slabs)


# ---------------- parameter init (deterministic, synthetic) ----------------
def _xavier(key, shape, fan_in, fan_out):
    a = (6.0 / (fan_in + fan_out)) ** 0.5
    return jax.random.uniform(key, shape, jnp.float32, -a, a)


def init_layer_params(key, S, D, F):
    ks = jax.random.split(key, 7)
    se = jax.random.normal(ks[0], (S, S), jnp.float32)
    p = {
        'score_embed': se + se.T,                   # symmetric, as in the reference init
        'w1_t': _xavier(ks[1], (D, D), D, D),       # stored transposed: y = x @ w1_t + b1
        'b1': jax.random.uniform(ks[2], (D,), jnp.float32, -D ** -0.5, D ** -0.5),
        'w2_t': _xavier(ks[3], (S, F), S, F),
        'b2': jax.random.uniform(ks[4], (F,), jnp.float32, -S ** -0.5, S ** -0.5),
        'w3': _xavier(ks[5], (F, 1), F, 1),
        'b3': jax.random.uniform(ks[6], (), jnp.float32, -F ** -0.5, F ** -0.5),
    }
    for name, n in (('bn1', 1), ('bn2', F), ('bn3', 1)):
        shape = (n,) if n > 1 else ()
        p[name + '_gamma'] = jnp.ones(shape, jnp.float32)
        p[name + '_beta'] = jnp.zeros(shape, jnp.float32)
        p[name + '_mean'] = jnp.zeros(shape, jnp.float32)
        p[name + '_var'] = jnp.ones(shape, jnp.float32)
    return p


def init_params(key, S, D, F, num_layers):
    keys = jax.random.split(key, num_layers)
    return {
        'layers': [init_layer_params(k, S, D, F) for k in keys],
        'norm_gamma': jnp.ones((), jnp.float32),
        'norm_beta': jnp.zeros((), jnp.float32),
        'norm_mean': jnp.zeros((), jnp.float32),
        'norm_var': jnp.ones((), jnp.float32),
    }


# -------- fold eval-mode BNs into the linears and pack one param slab per layer --------
def _build_layer_slab(p, *, Q, K, rows):
    bn1_s = p['bn1_gamma'] * lax.rsqrt(p['bn1_var'] + BN_EPS)   # bn1 = BatchNorm1d(1): scalar
    bn1_b = p['bn1_beta'] - p['bn1_mean'] * bn1_s
    bn2_s = p['bn2_gamma'] * lax.rsqrt(p['bn2_var'] + BN_EPS)
    bn2_b = p['bn2_beta'] - p['bn2_mean'] * bn2_s
    bn3_s = p['bn3_gamma'] * lax.rsqrt(p['bn3_var'] + BN_EPS)

    w2_eff = bn1_s * p['w2_t']                                  # bn1 -> fc2 weight
    b2_eff = p['b2'] + bn1_b * jnp.sum(p['w2_t'], axis=0)       # bn1 -> fc2 bias
    w3_eff = p['w3'][:, 0] * bn3_s                              # bn3 scale -> fc3 weight

    gate = jax.nn.sigmoid(p['score_embed'])                     # (S, S) indexed [s, t]
    gA = jnp.tile(gate, (K, Q))                                 # (K*S, Q*S) panel gate
    gB = jnp.tile(gate.T, (Q, K))                               # (Q*S, K*S) panel gate

    slab = jnp.zeros((rows['rows'], 128), jnp.float32)

    def put(s, r, m):
        m = jnp.asarray(m, jnp.float32)
        return s.at[r:r + m.shape[0], 0:m.shape[1]].set(m)

    slab = put(slab, rows['w1'], p['w1_t'])
    slab = put(slab, rows['b1'], p['b1'][None, :])
    slab = put(slab, rows['gA'], gA)
    slab = put(slab, rows['gB'], gB)
    slab = put(slab, rows['w2'], w2_eff)
    slab = put(slab, rows['vec'] + 0, b2_eff[None, :])
    slab = put(slab, rows['vec'] + 1, bn2_s[None, :])
    slab = put(slab, rows['vec'] + 2, bn2_b[None, :])
    slab = put(slab, rows['vec'] + 3, w3_eff[None, :])
    return slab


def _layer_c3(p):
    bn3_s = p['bn3_gamma'] * lax.rsqrt(p['bn3_var'] + BN_EPS)
    # fc3's bias hits both the prob and gal rows before score.view(-1, 2).sum(-1),
    # hence the factor of 2 on b3; bn3 shift folded in as well.
    return 2.0 * p['b3'] * bn3_s + p['bn3_beta'] - p['bn3_mean'] * bn3_s


# ---------------- full forward (decoder over NUM_LAYERS layers) ----------------
def trans_matcher_forward(tgt, memory, params):
    # tgt    : (Q, h, w, L*D)  -- probe side (stored via make_kernel)
    # memory : (K, h, w, L*D)  -- gallery features
    Qn, h, w, dt = tgt.shape
    Kn = memory.shape[0]
    S = h * w
    L = len(params['layers'])
    D = dt // L
    F = params['layers'][0]['w2_t'].shape[1]

    # split the stacked d_model chunks per layer and flatten to (L, B*S, D)
    tgt_l = tgt.reshape(Qn, S, L, D).transpose(2, 0, 1, 3).reshape(L, Qn * S, D)
    mem_l = memory.reshape(Kn, S, L, D).transpose(2, 0, 1, 3).reshape(L, Kn * S, D)

    rows = _slab_layout(S, D, Qn, Kn)
    slabs = jnp.stack(
        [_build_layer_slab(p, Q=Qn, K=Kn, rows=rows) for p in params['layers']], axis=0)
    c3 = jnp.stack([_layer_c3(p) for p in params['layers']], axis=0)          # (L,)

    packed = fused_decoder_layers(tgt_l, mem_l, slabs, seq_len=S, dim_ff=F, rows=rows)

    # ---- unpack the lane-dense per-layer slab (plain XLA reshapes / transposes) ----
    QS, KS = Qn * S, Kn * S
    prob_r = packed[:, 0:Kn, 0:QS]                          # [l, k, q*S+t]
    ig_r = packed[:, 0:Kn, QS:2 * QS]
    gal_r = packed[:, Kn:Kn + Qn, 0:KS]                     # [l, q, k*S+s]
    ip_r = packed[:, Kn:Kn + Qn, KS:2 * KS]
    z_row = packed[:, Kn + Qn, 0:2 * Qn * Kn]               # (L, 2*Q*K)

    zp = z_row[:, :Qn * Kn].reshape(L, Qn, Kn)              # fc3(prob rows), pair q*K+k
    zg = z_row[:, Qn * Kn:].reshape(L, Kn, Qn).transpose(0, 2, 1)   # fc3(gal rows)
    layer_score = zp + zg + c3[:, None, None]               # per-layer bn3-normalized score

    # sum per-layer scores, then the decoder-level BatchNorm1d(1) in eval mode
    score_sum = layer_score.sum(axis=0)                     # (Q, K)
    dn_s = params['norm_gamma'] * lax.rsqrt(params['norm_var'] + BN_EPS)
    score = (score_sum - params['norm_mean']) * dn_s + params['norm_beta']

    # match_index: indices are returned as float32 values (torch returns int64)
    prob = prob_r.reshape(L, Kn, Qn, S).transpose(0, 2, 1, 3)    # (L, Q, K, S)
    ig = ig_r.reshape(L, Kn, Qn, S).transpose(0, 2, 1, 3)
    gal = gal_r.reshape(L, Qn, Kn, S)
    ip = ip_r.reshape(L, Qn, Kn, S)
    match_index = (jnp.stack([prob, ig, gal, ip], axis=3)        # (L, Q, K, 4, S)
                   .transpose(1, 2, 0, 3, 4)
                   .reshape(Qn, Kn, L, 4, h, w))
    return score, match_index


# ---------------- demo ----------------
if __name__ == "__main__":
    root = jax.random.PRNGKey(0)
    k_param, k_mem, k_feat = jax.random.split(root, 3)

    params = init_params(k_param, SEQ_LEN, D_MODEL, DIM_FF, NUM_LAYERS)

    # make_kernel(mem_features); forward(features)
    mem_features = jax.random.normal(
        k_mem, (NUM_Q, SEQ_H, SEQ_W, NUM_LAYERS * D_MODEL), jnp.float32)
    features = jax.random.normal(
        k_feat, (NUM_K, SEQ_H, SEQ_W, NUM_LAYERS * D_MODEL), jnp.float32)

    fwd = jax.jit(trans_matcher_forward)
    score, match_index = fwd(mem_features, features, params)
    score = jax.block_until_ready(score)
    match_index = jax.block_until_ready(match_index)

    assert score.shape == (NUM_Q, NUM_K)
    assert match_index.shape == (NUM_Q, NUM_K, NUM_LAYERS, 4, SEQ_H, SEQ_W)
    assert bool(jnp.all(jnp.isfinite(score))) and bool(jnp.all(jnp.isfinite(match_index)))
    # index channels (index_in_gal / index_in_prob) must be valid positions in [0, seq_len)
    idx_vals = match_index[:, :, :, [1, 3], :, :]
    assert bool(jnp.all((idx_vals >= 0) & (idx_vals < SEQ_LEN)))
    print("KERNEL_OK")
</pallas_src>

<mosaic_0001>
module attributes {stable_mosaic.version = 11 : i64} {
  func.func @kernel(%arg0: i32, %arg1: memref<2x16x32xf32, #tpu.memory_space<vmem>>, %arg2: memref<2x24x32xf32, #tpu.memory_space<vmem>>, %arg3: memref<2x96x128xf32, #tpu.memory_space<vmem>>, %arg4: memref<2x8x128xf32, #tpu.memory_space<vmem>>) attributes {dimension_semantics = [#tpu.dimension_semantics<parallel>], iteration_bounds = array<i64: 1>, scalar_prefetch = 0 : i64, scratch_operands = 0 : i64, tpu.core_type = #tpu.core_type<tc>, window_params = [{transform_indices = @transform_0, window_bounds = array<i64: 2, 16, 32>}, {transform_indices = @transform_1, window_bounds = array<i64: 2, 24, 32>}, {transform_indices = @transform_2, window_bounds = array<i64: 2, 96, 128>}, {transform_indices = @transform_3, window_bounds = array<i64: 2, 8, 128>}]} {
    %c0 = arith.constant 0 : index
    %c0_0 = arith.constant 0 : index
    %c0_1 = arith.constant 0 : index
    %0 = vector.load %arg3[%c0, %c0_0, %c0_1] : memref<2x96x128xf32, #tpu.memory_space<vmem>>, vector<1x32x32xf32>
    %1 = vector.shape_cast %0 : vector<1x32x32xf32> to vector<32x32xf32>
    %c0_2 = arith.constant 0 : index
    %c32 = arith.constant 32 : index
    %c0_3 = arith.constant 0 : index
    %2 = vector.load %arg3[%c0_2, %c32, %c0_3] : memref<2x96x128xf32, #tpu.memory_space<vmem>>, vector<1x1x32xf32>
    %3 = vector.shape_cast %2 : vector<1x1x32xf32> to vector<1x32xf32>
    %c0_4 = arith.constant 0 : index
    %c40 = arith.constant 40 : index
    %c0_5 = arith.constant 0 : index
    %4 = vector.load %arg3[%c0_4, %c40, %c0_5] : memref<2x96x128xf32, #tpu.memory_space<vmem>>, vector<1x24x16xf32>
    %5 = vector.shape_cast %4 : vector<1x24x16xf32> to vector<24x16xf32>
    %c0_6 = arith.constant 0 : index
    %c64 = arith.constant 64 : index
    %c0_7 = arith.constant 0 : index
    %6 = vector.load %arg3[%c0_6, %c64, %c0_7] : memref<2x96x128xf32, #tpu.memory_space<vmem>>, vector<1x16x24xf32>
    %7 = vector.shape_cast %6 : vector<1x16x24xf32> to vector<16x24xf32>
    %c0_8 = arith.constant 0 : index
    %c80 = arith.constant 80 : index
    %c0_9 = arith.constant 0 : index
    %8 = vector.load %arg3[%c0_8, %c80, %c0_9] : memref<2x96x128xf32, #tpu.memory_space<vmem>>, vector<1x8x64xf32>
    %9 = vector.shape_cast %8 : vector<1x8x64xf32> to vector<8x64xf32>
    %c0_10 = arith.constant 0 : index
    %c88 = arith.constant 88 : index
    %c0_11 = arith.constant 0 : index
    %10 = vector.load %arg3[%c0_10, %c88, %c0_11] : memref<2x96x128xf32, #tpu.memory_space<vmem>>, vector<1x1x64xf32>
    %11 = vector.shape_cast %10 : vector<1x1x64xf32> to vector<1x64xf32>
    %c0_12 = arith.constant 0 : index
    %c89 = arith.constant 89 : index
    %c0_13 = arith.constant 0 : index
    %12 = vector.load %arg3[%c0_12, %c89, %c0_13] : memref<2x96x128xf32, #tpu.memory_space<vmem>>, vector<1x1x64xf32>
    %13 = vector.shape_cast %12 : vector<1x1x64xf32> to vector<1x64xf32>
    %c0_14 = arith.constant 0 : index
    %c90 = arith.constant 90 : index
    %c0_15 = arith.constant 0 : index
    %14 = vector.load %arg3[%c0_14, %c90, %c0_15] : memref<2x96x128xf32, #tpu.memory_space<vmem>>, vector<1x1x64xf32>
    %15 = vector.shape_cast %14 : vector<1x1x64xf32> to vector<1x64xf32>
    %c0_16 = arith.constant 0 : index
    %c91 = arith.constant 91 : index
    %c0_17 = arith.constant 0 : index
    %16 = vector.load %arg3[%c0_16, %c91, %c0_17] : memref<2x96x128xf32, #tpu.memory_space<vmem>>, vector<1x1x64xf32>
    %17 = vector.shape_cast %16 : vector<1x1x64xf32> to vector<1x64xf32>
    %c0_18 = arith.constant 0 : index
    %c0_19 = arith.constant 0 : index
    %c0_20 = arith.constant 0 : index
    %18 = vector.load %arg1[%c0_18, %c0_19, %c0_20] : memref<2x16x32xf32, #tpu.memory_space<vmem>>, vector<1x16x32xf32>
    %19 = vector.shape_cast %18 : vector<1x16x32xf32> to vector<16x32xf32>
    %cst = arith.constant dense<0.000000e+00> : vector<16x32xf32>
    %20 = tpu.matmul %19, %1, %cst {dimension_numbers = #tpu.dot_dimension_numbers<[1], [0], [0], [1], [0, 0, 1, 1], [], []>} : vector<16x32xf32>, vector<32x32xf32>, vector<16x32xf32> -> vector<16x32xf32>
    %21 = vector.broadcast %3 : vector<1x32xf32> to vector<16x32xf32>
    %22 = arith.addf %20, %21 : vector<16x32xf32>
    %c0_21 = arith.constant 0 : index
    %c0_22 = arith.constant 0 : index
    %c0_23 = arith.constant 0 : index
    %23 = vector.load %arg2[%c0_21, %c0_22, %c0_23] : memref<2x24x32xf32, #tpu.memory_space<vmem>>, vector<1x24x32xf32>
    %24 = vector.shape_cast %23 : vector<1x24x32xf32> to vector<24x32xf32>
    %cst_24 = arith.constant dense<0.000000e+00> : vector<24x32xf32>
    %25 = tpu.matmul %24, %1, %cst_24 {dimension_numbers = #tpu.dot_dimension_numbers<[1], [0], [0], [1], [0, 0, 1, 1], [], []>} : vector<24x32xf32>, vector<32x32xf32>, vector<24x32xf32> -> vector<24x32xf32>
    %26 = vector.broadcast %3 : vector<1x32xf32> to vector<24x32xf32>
    %27 = arith.addf %25, %26 : vector<24x32xf32>
    %cst_25 = arith.constant dense<0.000000e+00> : vector<24x16xf32>
    %28 = tpu.matmul %27, %22, %cst_25 {dimension_numbers = #tpu.dot_dimension_numbers<[1], [1], [0], [0], [0, 0, 1, 0], [], []>} : vector<24x32xf32>, vector<16x32xf32>, vector<24x16xf32> -> vector<24x16xf32>
    %29 = arith.mulf %28, %5 : vector<24x16xf32>
    %cst_26 = arith.constant dense<0.000000e+00> : vector<16x24xf32>
    %30 = tpu.matmul %22, %27, %cst_26 {dimension_numbers = #tpu.dot_dimension_numbers<[1], [1], [0], [0], [0, 0, 1, 0], [], []>} : vector<16x32xf32>, vector<24x32xf32>, vector<16x24xf32> -> vector<16x24xf32>
    %31 = arith.mulf %30, %7 : vector<16x24xf32>
    %32 = tpu.iota {dimensions = array<i32: 0>} : vector<8x16xi32>
    %33 = tpu.iota {dimensions = array<i32: 0>} : vector<8x24xi32>
    %34 = vector.extract_strided_slice %29 {offsets = [0, 0], sizes = [8, 16], strides = [1, 1]} : vector<24x16xf32> to vector<8x16xf32>
    %cst_27 = arith.constant dense<0xFF800000> : vector<16xf32>
    %35 = vector.multi_reduction <maximumf>, %34, %cst_27 [0] : vector<8x16xf32> to vector<16xf32>
    %36 = vector.shape_cast %35 : vector<16xf32> to vector<1x16xf32>
    %37 = vector.broadcast %36 : vector<1x16xf32> to vector<8x16xf32>
    %38 = arith.cmpf oeq, %34, %37 : vector<8x16xf32>
    %c8_i32 = arith.constant 8 : i32
    %39 = vector.broadcast %c8_i32 : i32 to vector<8x16xi32>
    %40 = arith.select %38, %32, %39 : vector<8x16xi1>, vector<8x16xi32>
    %cst_28 = arith.constant dense<2147483647> : vector<16xi32>
    %41 = vector.multi_reduction <minsi>, %40, %cst_28 [0] : vector<8x16xi32> to vector<16xi32>
    %42 = vector.shape_cast %41 : vector<16xi32> to vector<1x16xi32>
    %43 = vector.extract_strided_slice %29 {offsets = [8, 0], sizes = [8, 16], strides = [1, 1]} : vector<24x16xf32> to vector<8x16xf32>
    %cst_29 = arith.constant dense<0xFF800000> : vector<16xf32>
    %44 = vector.multi_reduction <maximumf>, %43, %cst_29 [0] : vector<8x16xf32> to vector<16xf32>
    %45 = vector.shape_cast %44 : vector<16xf32> to vector<1x16xf32>
    %46 = vector.broadcast %45 : vector<1x16xf32> to vector<8x16xf32>
    %47 = arith.cmpf oeq, %43, %46 : vector<8x16xf32>
    %c8_i32_30 = arith.constant 8 : i32
    %48 = vector.broadcast %c8_i32_30 : i32 to vector<8x16xi32>
    %49 = arith.select %47, %32, %48 : vector<8x16xi1>, vector<8x16xi32>
    %cst_31 = arith.constant dense<2147483647> : vector<16xi32>
    %50 = vector.multi_reduction <minsi>, %49, %cst_31 [0] : vector<8x16xi32> to vector<16xi32>
    %51 = vector.shape_cast %50 : vector<16xi32> to vector<1x16xi32>
    %52 = vector.extract_strided_slice %29 {offsets = [16, 0], sizes = [8, 16], strides = [1, 1]} : vector<24x16xf32> to vector<8x16xf32>
    %cst_32 = arith.constant dense<0xFF800000> : vector<16xf32>
    %53 = vector.multi_reduction <maximumf>, %52, %cst_32 [0] : vector<8x16xf32> to vector<16xf32>
    %54 = vector.shape_cast %53 : vector<16xf32> to vector<1x16xf32>
    %55 = vector.broadcast %54 : vector<1x16xf32> to vector<8x16xf32>
    %56 = arith.cmpf oeq, %52, %55 : vector<8x16xf32>
    %c8_i32_33 = arith.constant 8 : i32
    %57 = vector.broadcast %c8_i32_33 : i32 to vector<8x16xi32>
    %58 = arith.select %56, %32, %57 : vector<8x16xi1>, vector<8x16xi32>
    %cst_34 = arith.constant dense<2147483647> : vector<16xi32>
    %59 = vector.multi_reduction <minsi>, %58, %cst_34 [0] : vector<8x16xi32> to vector<16xi32>
    %60 = vector.shape_cast %59 : vector<16xi32> to vector<1x16xi32>
    %61 = vector.extract_strided_slice %31 {offsets = [0, 0], sizes = [8, 24], strides = [1, 1]} : vector<16x24xf32> to vector<8x24xf32>
    %cst_35 = arith.constant dense<0xFF800000> : vector<24xf32>
    %62 = vector.multi_reduction <maximumf>, %61, %cst_35 [0] : vector<8x24xf32> to vector<24xf32>
    %63 = vector.shape_cast %62 : vector<24xf32> to vector<1x24xf32>
    %64 = vector.broadcast %63 : vector<1x24xf32> to vector<8x24xf32>
    %65 = arith.cmpf oeq, %61, %64 : vector<8x24xf32>
    %c8_i32_36 = arith.constant 8 : i32
    %66 = vector.broadcast %c8_i32_36 : i32 to vector<8x24xi32>
    %67 = arith.select %65, %33, %66 : vector<8x24xi1>, vector<8x24xi32>
    %cst_37 = arith.constant dense<2147483647> : vector<24xi32>
    %68 = vector.multi_reduction <minsi>, %67, %cst_37 [0] : vector<8x24xi32> to vector<24xi32>
    %69 = vector.shape_cast %68 : vector<24xi32> to vector<1x24xi32>
    %70 = vector.extract_strided_slice %31 {offsets = [8, 0], sizes = [8, 24], strides = [1, 1]} : vector<16x24xf32> to vector<8x24xf32>
    %cst_38 = arith.constant dense<0xFF800000> : vector<24xf32>
    %71 = vector.multi_reduction <maximumf>, %70, %cst_38 [0] : vector<8x24xf32> to vector<24xf32>
    %72 = vector.shape_cast %71 : vector<24xf32> to vector<1x24xf32>
    %73 = vector.broadcast %72 : vector<1x24xf32> to vector<8x24xf32>
    %74 = arith.cmpf oeq, %70, %73 : vector<8x24xf32>
    %c8_i32_39 = arith.constant 8 : i32
    %75 = vector.broadcast %c8_i32_39 : i32 to vector<8x24xi32>
    %76 = arith.select %74, %33, %75 : vector<8x24xi1>, vector<8x24xi32>
    %cst_40 = arith.constant dense<2147483647> : vector<24xi32>
    %77 = vector.multi_reduction <minsi>, %76, %cst_40 [0] : vector<8x24xi32> to vector<24xi32>
    %78 = vector.shape_cast %77 : vector<24xi32> to vector<1x24xi32>
    %79 = tpu.concatenate %36, %45, %54 in 0 : vector<1x16xf32>, vector<1x16xf32>, vector<1x16xf32> -> vector<3x16xf32>
    %80 = tpu.concatenate %42, %51, %60 in 0 : vector<1x16xi32>, vector<1x16xi32>, vector<1x16xi32> -> vector<3x16xi32>
    %81 = arith.sitofp %80 : vector<3x16xi32> to vector<3x16xf32>
    %82 = tpu.concatenate %63, %72 in 0 : vector<1x24xf32>, vector<1x24xf32> -> vector<2x24xf32>
    %83 = tpu.concatenate %69, %78 in 0 : vector<1x24xi32>, vector<1x24xi32> -> vector<2x24xi32>
    %84 = arith.sitofp %83 : vector<2x24xi32> to vector<2x24xf32>
    %85 = vector.extract_strided_slice %79 {offsets = [0, 0], sizes = [3, 8], strides = [1, 1]} : vector<3x16xf32> to vector<3x8xf32>
    %86 = vector.extract_strided_slice %79 {offsets = [0, 8], sizes = [3, 8], strides = [1, 1]} : vector<3x16xf32> to vector<3x8xf32>
    %87 = vector.extract_strided_slice %82 {offsets = [0, 0], sizes = [2, 8], strides = [1, 1]} : vector<2x24xf32> to vector<2x8xf32>
    %88 = vector.extract_strided_slice %82 {offsets = [0, 8], sizes = [2, 8], strides = [1, 1]} : vector<2x24xf32> to vector<2x8xf32>
    %89 = vector.extract_strided_slice %82 {offsets = [0, 16], sizes = [2, 8], strides = [1, 1]} : vector<2x24xf32> to vector<2x8xf32>
    %90 = tpu.concatenate %85, %86, %87, %88, %89 in 0 : vector<3x8xf32>, vector<3x8xf32>, vector<2x8xf32>, vector<2x8xf32>, vector<2x8xf32> -> vector<12x8xf32>
    %cst_41 = arith.constant dense<0.000000e+00> : vector<12x64xf32>
    %91 = tpu.matmul %90, %9, %cst_41 {dimension_numbers = #tpu.dot_dimension_numbers<[1], [0], [0], [1], [0, 0, 1, 1], [], []>} : vector<12x8xf32>, vector<8x64xf32>, vector<12x64xf32> -> vector<12x64xf32>
    %92 = vector.broadcast %11 : vector<1x64xf32> to vector<12x64xf32>
    %93 = arith.addf %91, %92 : vector<12x64xf32>
    %94 = vector.broadcast %13 : vector<1x64xf32> to vector<12x64xf32>
    %95 = arith.mulf %93, %94 : vector<12x64xf32>
    %96 = vector.broadcast %15 : vector<1x64xf32> to vector<12x64xf32>
    %97 = arith.addf %95, %96 : vector<12x64xf32>
    %cst_42 = arith.constant 0.000000e+00 : f32
    %98 = vector.broadcast %cst_42 : f32 to vector<12x64xf32>
    %99 = arith.maximumf %97, %98 : vector<12x64xf32>
    %cst_43 = arith.constant dense<0.000000e+00> : vector<1x12xf32>
    %100 = tpu.matmul %17, %99, %cst_43 {dimension_numbers = #tpu.dot_dimension_numbers<[1], [1], [0], [0], [0, 0, 1, 0], [], []>} : vector<1x64xf32>, vector<12x64xf32>, vector<1x12xf32> -> vector<1x12xf32>
    %cst_44 = arith.constant 0.000000e+00 : f32
    %101 = vector.broadcast %cst_44 : f32 to vector<3x96xf32>
    %102 = tpu.concatenate %79, %81, %101 in 1 : vector<3x16xf32>, vector<3x16xf32>, vector<3x96xf32> -> vector<3x128xf32>
    %cst_45 = arith.constant 0.000000e+00 : f32
    %103 = vector.broadcast %cst_45 : f32 to vector<2x80xf32>
    %104 = tpu.concatenate %82, %84, %103 in 1 : vector<2x24xf32>, vector<2x24xf32>, vector<2x80xf32> -> vector<2x128xf32>
    %cst_46 = arith.constant 0.000000e+00 : f32
    %105 = vector.broadcast %cst_46 : f32 to vector<1x116xf32>
    %106 = tpu.concatenate %100, %105 in 1 : vector<1x12xf32>, vector<1x116xf32> -> vector<1x128xf32>
    %cst_47 = arith.constant 0.000000e+00 : f32
    %107 = vector.broadcast %cst_47 : f32 to vector<2x128xf32>
    %108 = tpu.concatenate %102, %104, %106, %107 in 0 : vector<3x128xf32>, vector<2x128xf32>, vector<1x128xf32>, vector<2x128xf32> -> vector<8x128xf32>
    %c0_48 = arith.constant 0 : index
    %c0_49 = arith.constant 0 : index
    %c0_50 = arith.constant 0 : index
    %109 = vector.load %arg4[%c0_48, %c0_49, %c0_50] : memref<2x8x128xf32, #tpu.memory_space<vmem>>, vector<1x8x128xf32>
    %110 = vector.shape_cast %109 : vector<1x8x128xf32> to vector<8x128xf32>
    %111 = vector.shape_cast %108 : vector<8x128xf32> to vector<1x8x128xf32>
    tpu.vector_store %arg4[%c0_48, %c0_49, %c0_50], %111 {strides = array<i32>} : memref<2x8x128xf32, #tpu.memory_space<vmem>>, vector<1x8x128xf32>,
    %c1 = arith.constant 1 : index
    %c0_51 = arith.constant 0 : index
    %c0_52 = arith.constant 0 : index
    %112 = vector.load %arg3[%c1, %c0_51, %c0_52] : memref<2x96x128xf32, #tpu.memory_space<vmem>>, vector<1x32x32xf32>
    %113 = vector.shape_cast %112 : vector<1x32x32xf32> to vector<32x32xf32>
    %c1_53 = arith.constant 1 : index
    %c32_54 = arith.constant 32 : index
    %c0_55 = arith.constant 0 : index
    %114 = vector.load %arg3[%c1_53, %c32_54, %c0_55] : memref<2x96x128xf32, #tpu.memory_space<vmem>>, vector<1x1x32xf32>
    %115 = vector.shape_cast %114 : vector<1x1x32xf32> to vector<1x32xf32>
    %c1_56 = arith.constant 1 : index
    %c40_57 = arith.constant 40 : index
    %c0_58 = arith.constant 0 : index
    %116 = vector.load %arg3[%c1_56, %c40_57, %c0_58] : memref<2x96x128xf32, #tpu.memory_space<vmem>>, vector<1x24x16xf32>
    %117 = vector.shape_cast %116 : vector<1x24x16xf32> to vector<24x16xf32>
    %c1_59 = arith.constant 1 : index
    %c64_60 = arith.constant 64 : index
    %c0_61 = arith.constant 0 : index
    %118 = vector.load %arg3[%c1_59, %c64_60, %c0_61] : memref<2x96x128xf32, #tpu.memory_space<vmem>>, vector<1x16x24xf32>
    %119 = vector.shape_cast %118 : vector<1x16x24xf32> to vector<16x24xf32>
    %c1_62 = arith.constant 1 : index
    %c80_63 = arith.constant 80 : index
    %c0_64 = arith.constant 0 : index
    %120 = vector.load %arg3[%c1_62, %c80_63, %c0_64] : memref<2x96x128xf32, #tpu.memory_space<vmem>>, vector<1x8x64xf32>
    %121 = vector.shape_cast %120 : vector<1x8x64xf32> to vector<8x64xf32>
    %c1_65 = arith.constant 1 : index
    %c88_66 = arith.constant 88 : index
    %c0_67 = arith.constant 0 : index
    %122 = vector.load %arg3[%c1_65, %c88_66, %c0_67] : memref<2x96x128xf32, #tpu.memory_space<vmem>>, vector<1x1x64xf32>
    %123 = vector.shape_cast %122 : vector<1x1x64xf32> to vector<1x64xf32>
    %c1_68 = arith.constant 1 : index
    %c89_69 = arith.constant 89 : index
    %c0_70 = arith.constant 0 : index
    %124 = vector.load %arg3[%c1_68, %c89_69, %c0_70] : memref<2x96x128xf32, #tpu.memory_space<vmem>>, vector<1x1x64xf32>
    %125 = vector.shape_cast %124 : vector<1x1x64xf32> to vector<1x64xf32>
    %c1_71 = arith.constant 1 : index
    %c90_72 = arith.constant 90 : index
    %c0_73 = arith.constant 0 : index
    %126 = vector.load %arg3[%c1_71, %c90_72, %c0_73] : memref<2x96x128xf32, #tpu.memory_space<vmem>>, vector<1x1x64xf32>
    %127 = vector.shape_cast %126 : vector<1x1x64xf32> to vector<1x64xf32>
    %c1_74 = arith.constant 1 : index
    %c91_75 = arith.constant 91 : index
    %c0_76 = arith.constant 0 : index
    %128 = vector.load %arg3[%c1_74, %c91_75, %c0_76] : memref<2x96x128xf32, #tpu.memory_space<vmem>>, vector<1x1x64xf32>
    %129 = vector.shape_cast %128 : vector<1x1x64xf32> to vector<1x64xf32>
    %c1_77 = arith.constant 1 : index
    %c0_78 = arith.constant 0 : index
    %c0_79 = arith.constant 0 : index
    %130 = vector.load %arg1[%c1_77, %c0_78, %c0_79] : memref<2x16x32xf32, #tpu.memory_space<vmem>>, vector<1x16x32xf32>
    %131 = vector.shape_cast %130 : vector<1x16x32xf32> to vector<16x32xf32>
    %cst_80 = arith.constant dense<0.000000e+00> : vector<16x32xf32>
    %132 = tpu.matmul %131, %113, %cst_80 {dimension_numbers = #tpu.dot_dimension_numbers<[1], [0], [0], [1], [0, 0, 1, 1], [], []>} : vector<16x32xf32>, vector<32x32xf32>, vector<16x32xf32> -> vector<16x32xf32>
    %133 = vector.broadcast %115 : vector<1x32xf32> to vector<16x32xf32>
    %134 = arith.addf %132, %133 : vector<16x32xf32>
    %c1_81 = arith.constant 1 : index
    %c0_82 = arith.constant 0 : index
    %c0_83 = arith.constant 0 : index
    %135 = vector.load %arg2[%c1_81, %c0_82, %c0_83] : memref<2x24x32xf32, #tpu.memory_space<vmem>>, vector<1x24x32xf32>
    %136 = vector.shape_cast %135 : vector<1x24x32xf32> to vector<24x32xf32>
    %cst_84 = arith.constant dense<0.000000e+00> : vector<24x32xf32>
    %137 = tpu.matmul %136, %113, %cst_84 {dimension_numbers = #tpu.dot_dimension_numbers<[1], [0], [0], [1], [0, 0, 1, 1], [], []>} : vector<24x32xf32>, vector<32x32xf32>, vector<24x32xf32> -> vector<24x32xf32>
    %138 = vector.broadcast %115 : vector<1x32xf32> to vector<24x32xf32>
    %139 = arith.addf %137, %138 : vector<24x32xf32>
    %cst_85 = arith.constant dense<0.000000e+00> : vector<24x16xf32>
    %140 = tpu.matmul %139, %134, %cst_85 {dimension_numbers = #tpu.dot_dimension_numbers<[1], [1], [0], [0], [0, 0, 1, 0], [], []>} : vector<24x32xf32>, vector<16x32xf32>, vector<24x16xf32> -> vector<24x16xf32>
    %141 = arith.mulf %140, %117 : vector<24x16xf32>
    %cst_86 = arith.constant dense<0.000000e+00> : vector<16x24xf32>
    %142 = tpu.matmul %134, %139, %cst_86 {dimension_numbers = #tpu.dot_dimension_numbers<[1], [1], [0], [0], [0, 0, 1, 0], [], []>} : vector<16x32xf32>, vector<24x32xf32>, vector<16x24xf32> -> vector<16x24xf32>
    %143 = arith.mulf %142, %119 : vector<16x24xf32>
    %144 = tpu.iota {dimensions = array<i32: 0>} : vector<8x16xi32>
    %145 = tpu.iota {dimensions = array<i32: 0>} : vector<8x24xi32>
    %146 = vector.extract_strided_slice %141 {offsets = [0, 0], sizes = [8, 16], strides = [1, 1]} : vector<24x16xf32> to vector<8x16xf32>
    %cst_87 = arith.constant dense<0xFF800000> : vector<16xf32>
    %147 = vector.multi_reduction <maximumf>, %146, %cst_87 [0] : vector<8x16xf32> to vector<16xf32>
    %148 = vector.shape_cast %147 : vector<16xf32> to vector<1x16xf32>
    %149 = vector.broadcast %148 : vector<1x16xf32> to vector<8x16xf32>
    %150 = arith.cmpf oeq, %146, %149 : vector<8x16xf32>
    %c8_i32_88 = arith.constant 8 : i32
    %151 = vector.broadcast %c8_i32_88 : i32 to vector<8x16xi32>
    %152 = arith.select %150, %144, %151 : vector<8x16xi1>, vector<8x16xi32>
    %cst_89 = arith.constant dense<2147483647> : vector<16xi32>
    %153 = vector.multi_reduction <minsi>, %152, %cst_89 [0] : vector<8x16xi32> to vector<16xi32>
    %154 = vector.shape_cast %153 : vector<16xi32> to vector<1x16xi32>
    %155 = vector.extract_strided_slice %141 {offsets = [8, 0], sizes = [8, 16], strides = [1, 1]} : vector<24x16xf32> to vector<8x16xf32>
    %cst_90 = arith.constant dense<0xFF800000> : vector<16xf32>
    %156 = vector.multi_reduction <maximumf>, %155, %cst_90 [0] : vector<8x16xf32> to vector<16xf32>
    %157 = vector.shape_cast %156 : vector<16xf32> to vector<1x16xf32>
    %158 = vector.broadcast %157 : vector<1x16xf32> to vector<8x16xf32>
    %159 = arith.cmpf oeq, %155, %158 : vector<8x16xf32>
    %c8_i32_91 = arith.constant 8 : i32
    %160 = vector.broadcast %c8_i32_91 : i32 to vector<8x16xi32>
    %161 = arith.select %159, %144, %160 : vector<8x16xi1>, vector<8x16xi32>
    %cst_92 = arith.constant dense<2147483647> : vector<16xi32>
    %162 = vector.multi_reduction <minsi>, %161, %cst_92 [0] : vector<8x16xi32> to vector<16xi32>
    %163 = vector.shape_cast %162 : vector<16xi32> to vector<1x16xi32>
    %164 = vector.extract_strided_slice %141 {offsets = [16, 0], sizes = [8, 16], strides = [1, 1]} : vector<24x16xf32> to vector<8x16xf32>
    %cst_93 = arith.constant dense<0xFF800000> : vector<16xf32>
    %165 = vector.multi_reduction <maximumf>, %164, %cst_93 [0] : vector<8x16xf32> to vector<16xf32>
    %166 = vector.shape_cast %165 : vector<16xf32> to vector<1x16xf32>
    %167 = vector.broadcast %166 : vector<1x16xf32> to vector<8x16xf32>
    %168 = arith.cmpf oeq, %164, %167 : vector<8x16xf32>
    %c8_i32_94 = arith.constant 8 : i32
    %169 = vector.broadcast %c8_i32_94 : i32 to vector<8x16xi32>
    %170 = arith.select %168, %144, %169 : vector<8x16xi1>, vector<8x16xi32>
    %cst_95 = arith.constant dense<2147483647> : vector<16xi32>
    %171 = vector.multi_reduction <minsi>, %170, %cst_95 [0] : vector<8x16xi32> to vector<16xi32>
    %172 = vector.shape_cast %171 : vector<16xi32> to vector<1x16xi32>
    %173 = vector.extract_strided_slice %143 {offsets = [0, 0], sizes = [8, 24], strides = [1, 1]} : vector<16x24xf32> to vector<8x24xf32>
    %cst_96 = arith.constant dense<0xFF800000> : vector<24xf32>
    %174 = vector.multi_reduction <maximumf>, %173, %cst_96 [0] : vector<8x24xf32> to vector<24xf32>
    %175 = vector.shape_cast %174 : vector<24xf32> to vector<1x24xf32>
    %176 = vector.broadcast %175 : vector<1x24xf32> to vector<8x24xf32>
    %177 = arith.cmpf oeq, %173, %176 : vector<8x24xf32>
    %c8_i32_97 = arith.constant 8 : i32
    %178 = vector.broadcast %c8_i32_97 : i32 to vector<8x24xi32>
    %179 = arith.select %177, %145, %178 : vector<8x24xi1>, vector<8x24xi32>
    %cst_98 = arith.constant dense<2147483647> : vector<24xi32>
    %180 = vector.multi_reduction <minsi>, %179, %cst_98 [0] : vector<8x24xi32> to vector<24xi32>
    %181 = vector.shape_cast %180 : vector<24xi32> to vector<1x24xi32>
    %182 = vector.extract_strided_slice %143 {offsets = [8, 0], sizes = [8, 24], strides = [1, 1]} : vector<16x24xf32> to vector<8x24xf32>
    %cst_99 = arith.constant dense<0xFF800000> : vector<24xf32>
    %183 = vector.multi_reduction <maximumf>, %182, %cst_99 [0] : vector<8x24xf32> to vector<24xf32>
    %184 = vector.shape_cast %183 : vector<24xf32> to vector<1x24xf32>
    %185 = vector.broadcast %184 : vector<1x24xf32> to vector<8x24xf32>
    %186 = arith.cmpf oeq, %182, %185 : vector<8x24xf32>
    %c8_i32_100 = arith.constant 8 : i32
    %187 = vector.broadcast %c8_i32_100 : i32 to vector<8x24xi32>
    %188 = arith.select %186, %145, %187 : vector<8x24xi1>, vector<8x24xi32>
    %cst_101 = arith.constant dense<2147483647> : vector<24xi32>
    %189 = vector.multi_reduction <minsi>, %188, %cst_101 [0] : vector<8x24xi32> to vector<24xi32>
    %190 = vector.shape_cast %189 : vector<24xi32> to vector<1x24xi32>
    %191 = tpu.concatenate %148, %157, %166 in 0 : vector<1x16xf32>, vector<1x16xf32>, vector<1x16xf32> -> vector<3x16xf32>
    %192 = tpu.concatenate %154, %163, %172 in 0 : vector<1x16xi32>, vector<1x16xi32>, vector<1x16xi32> -> vector<3x16xi32>
    %193 = arith.sitofp %192 : vector<3x16xi32> to vector<3x16xf32>
    %194 = tpu.concatenate %175, %184 in 0 : vector<1x24xf32>, vector<1x24xf32> -> vector<2x24xf32>
    %195 = tpu.concatenate %181, %190 in 0 : vector<1x24xi32>, vector<1x24xi32> -> vector<2x24xi32>
    %196 = arith.sitofp %195 : vector<2x24xi32> to vector<2x24xf32>
    %197 = vector.extract_strided_slice %191 {offsets = [0, 0], sizes = [3, 8], strides = [1, 1]} : vector<3x16xf32> to vector<3x8xf32>
    %198 = vector.extract_strided_slice %191 {offsets = [0, 8], sizes = [3, 8], strides = [1, 1]} : vector<3x16xf32> to vector<3x8xf32>
    %199 = vector.extract_strided_slice %194 {offsets = [0, 0], sizes = [2, 8], strides = [1, 1]} : vector<2x24xf32> to vector<2x8xf32>
    %200 = vector.extract_strided_slice %194 {offsets = [0, 8], sizes = [2, 8], strides = [1, 1]} : vector<2x24xf32> to vector<2x8xf32>
    %201 = vector.extract_strided_slice %194 {offsets = [0, 16], sizes = [2, 8], strides = [1, 1]} : vector<2x24xf32> to vector<2x8xf32>
    %202 = tpu.concatenate %197, %198, %199, %200, %201 in 0 : vector<3x8xf32>, vector<3x8xf32>, vector<2x8xf32>, vector<2x8xf32>, vector<2x8xf32> -> vector<12x8xf32>
    %cst_102 = arith.constant dense<0.000000e+00> : vector<12x64xf32>
    %203 = tpu.matmul %202, %121, %cst_102 {dimension_numbers = #tpu.dot_dimension_numbers<[1], [0], [0], [1], [0, 0, 1, 1], [], []>} : vector<12x8xf32>, vector<8x64xf32>, vector<12x64xf32> -> vector<12x64xf32>
    %204 = vector.broadcast %123 : vector<1x64xf32> to vector<12x64xf32>
    %205 = arith.addf %203, %204 : vector<12x64xf32>
    %206 = vector.broadcast %125 : vector<1x64xf32> to vector<12x64xf32>
    %207 = arith.mulf %205, %206 : vector<12x64xf32>
    %208 = vector.broadcast %127 : vector<1x64xf32> to vector<12x64xf32>
    %209 = arith.addf %207, %208 : vector<12x64xf32>
    %cst_103 = arith.constant 0.000000e+00 : f32
    %210 = vector.broadcast %cst_103 : f32 to vector<12x64xf32>
    %211 = arith.maximumf %209, %210 : vector<12x64xf32>
    %cst_104 = arith.constant dense<0.000000e+00> : vector<1x12xf32>
    %212 = tpu.matmul %129, %211, %cst_104 {dimension_numbers = #tpu.dot_dimension_numbers<[1], [1], [0], [0], [0, 0, 1, 0], [], []>} : vector<1x64xf32>, vector<12x64xf32>, vector<1x12xf32> -> vector<1x12xf32>
    %cst_105 = arith.constant 0.000000e+00 : f32
    %213 = vector.broadcast %cst_105 : f32 to vector<3x96xf32>
    %214 = tpu.concatenate %191, %193, %213 in 1 : vector<3x16xf32>, vector<3x16xf32>, vector<3x96xf32> -> vector<3x128xf32>
    %cst_106 = arith.constant 0.000000e+00 : f32
    %215 = vector.broadcast %cst_106 : f32 to vector<2x80xf32>
    %216 = tpu.concatenate %194, %196, %215 in 1 : vector<2x24xf32>, vector<2x24xf32>, vector<2x80xf32> -> vector<2x128xf32>
    %cst_107 = arith.constant 0.000000e+00 : f32
    %217 = vector.broadcast %cst_107 : f32 to vector<1x116xf32>
    %218 = tpu.concatenate %212, %217 in 1 : vector<1x12xf32>, vector<1x116xf32> -> vector<1x128xf32>
    %cst_108 = arith.constant 0.000000e+00 : f32
    %219 = vector.broadcast %cst_108 : f32 to vector<2x128xf32>
    %220 = tpu.concatenate %214, %216, %218, %219 in 0 : vector<3x128xf32>, vector<2x128xf32>, vector<1x128xf32>, vector<2x128xf32> -> vector<8x128xf32>
    %c1_109 = arith.constant 1 : index
    %c0_110 = arith.constant 0 : index
    %c0_111 = arith.constant 0 : index
    %221 = vector.load %arg4[%c1_109, %c0_110, %c0_111] : memref<2x8x128xf32, #tpu.memory_space<vmem>>, vector<1x8x128xf32>
    %222 = vector.shape_cast %221 : vector<1x8x128xf32> to vector<8x128xf32>
    %223 = vector.shape_cast %220 : vector<8x128xf32> to vector<1x8x128xf32>
    tpu.vector_store %arg4[%c1_109, %c0_110, %c0_111], %223 {strides = array<i32>} : memref<2x8x128xf32, #tpu.memory_space<vmem>>, vector<1x8x128xf32>,
    return
  }
  func.func @transform_0(%arg0: i32) -> (i32, i32, i32) {
    %c0_i32 = arith.constant 0 : i32
    %c0_i32_0 = arith.constant 0 : i32
    %c0_i32_1 = arith.constant 0 : i32
    return %arg0, %c0_i32, %c0_i32_0 : i32, i32, i32
  }
  func.func @transform_1(%arg0: i32) -> (i32, i32, i32) {
    %c0_i32 = arith.constant 0 : i32
    %c0_i32_0 = arith.constant 0 : i32
    %c0_i32_1 = arith.constant 0 : i32
    return %arg0, %c0_i32, %c0_i32_0 : i32, i32, i32
  }
  func.func @transform_2(%arg0: i32) -> (i32, i32, i32) {
    %c0_i32 = arith.constant 0 : i32
    %c0_i32_0 = arith.constant 0 : i32
    %c0_i32_1 = arith.constant 0 : i32
    return %arg0, %c0_i32, %c0_i32_0 : i32, i32, i32
  }
  func.func @transform_3(%arg0: i32) -> (i32, i32, i32) {
    %c0_i32 = arith.constant 0 : i32
    %c0_i32_0 = arith.constant 0 : i32
    %c0_i32_1 = arith.constant 0 : i32
    return %arg0, %c0_i32, %c0_i32_0 : i32, i32, i32
  }
}

</mosaic_0001>

<bundles_post_ra>
// kernel: tile.23
= control target key start
LH: loop header
LB: loop body
LE: loop exit
PB: predicated region body
PF: predicated region fallthrough
CT: control target
= control target key end

     0   :  { %s202_s0 = inlined_call_operand.vmem [shape: f32[8,8], index: 0, kind: input, shape index: {}]   ;;  %s203_s1 = inlined_call_operand.vmem [shape: f32[3,8,2,8], index: 1, kind: output, shape index: {}]  }
   0x1   :  { %v4_v0 = vld [vmem:[%s202_s0] ss:$0 sm:$0xff]  ;;  %v68_v1 = vld [vmem:[%s202_s0 + $0x1] ss:$0 sm:$0xff]  ;;  %v72_v2 = vld [vmem:[%s202_s0 + $0x2] ss:$0 sm:$0xff] }
   0x2   :  { %5 = vst [vmem:[%s203_s1] sm:$0x3] %v4_v0  ;;  %66 = vst [vmem:[%s203_s1 + $0x10] sm:$0x3] %v4_v0  ;;  %v76_v3 = vld [vmem:[%s202_s0 + $0x3] ss:$0 sm:$0xff] }
   0x3   :  { %67 = vst [vmem:[%s203_s1 + $0x20] sm:$0x3] %v4_v0  ;;  %69 = vst [vmem:[%s203_s1 + $0x2] sm:$0x3] %v68_v1  ;;  %v80_v4 = vld [vmem:[%s202_s0 + $0x4] ss:$0 sm:$0xff] }
   0x4   :  { %70 = vst [vmem:[%s203_s1 + $0x12] sm:$0x3] %v68_v1  ;;  %71 = vst [vmem:[%s203_s1 + $0x22] sm:$0x3] %v68_v1  ;;  %v84_v5 = vld [vmem:[%s202_s0 + $0x5] ss:$0 sm:$0xff] }
   0x5   :  { %73 = vst [vmem:[%s203_s1 + $0x4] sm:$0x3] %v72_v2  ;;  %74 = vst [vmem:[%s203_s1 + $0x14] sm:$0x3] %v72_v2  ;;  %v88_v6 = vld [vmem:[%s202_s0 + $0x6] ss:$0 sm:$0xff] }
   0x6   :  { %75 = vst [vmem:[%s203_s1 + $0x24] sm:$0x3] %v72_v2  ;;  %77 = vst [vmem:[%s203_s1 + $0x6] sm:$0x3] %v76_v3  ;;  %v92_v7 = vld [vmem:[%s202_s0 + $0x7] ss:$0 sm:$0xff] }
   0x7   :  { %78 = vst [vmem:[%s203_s1 + $0x16] sm:$0x3] %v76_v3  ;;  %79 = vst [vmem:[%s203_s1 + $0x26] sm:$0x3] %v76_v3 }
   0x8   :  { %81 = vst [vmem:[%s203_s1 + $0x8] sm:$0x3] %v80_v4  ;;  %82 = vst [vmem:[%s203_s1 + $0x18] sm:$0x3] %v80_v4 }
   0x9   :  { %83 = vst [vmem:[%s203_s1 + $0x28] sm:$0x3] %v80_v4  ;;  %85 = vst [vmem:[%s203_s1 + $0xa] sm:$0x3] %v84_v5 }
   0xa   :  { %86 = vst [vmem:[%s203_s1 + $0x1a] sm:$0x3] %v84_v5  ;;  %87 = vst [vmem:[%s203_s1 + $0x2a] sm:$0x3] %v84_v5 }
   0xb   :  { %89 = vst [vmem:[%s203_s1 + $0xc] sm:$0x3] %v88_v6  ;;  %90 = vst [vmem:[%s203_s1 + $0x1c] sm:$0x3] %v88_v6 }
   0xc   :  { %91 = vst [vmem:[%s203_s1 + $0x2c] sm:$0x3] %v88_v6  ;;  %93 = vst [vmem:[%s203_s1 + $0xe] sm:$0x3] %v92_v7 }
   0xd   :  { %94 = vst [vmem:[%s203_s1 + $0x1e] sm:$0x3] %v92_v7  ;;  %95 = vst [vmem:[%s203_s1 + $0x2e] sm:$0x3] %v92_v7 }

// kernel: tile.28
= control target key start
LH: loop header
LB: loop body
LE: loop exit
PB: predicated region body
PF: predicated region fallthrough
CT: control target
= control target key end

     0   :  { %s202_s0 = inlined_call_operand.vmem [shape: f32[8,8], index: 0, kind: input, shape index: {}]   ;;  %s203_s1 = inlined_call_operand.vmem [shape: f32[2,8,3,8], index: 1, kind: output, shape index: {}]  }
   0x1   :  { %v4_v0 = vld [vmem:[%s202_s0] ss:$0 sm:$0xff]  ;;  %v68_v1 = vld [vmem:[%s202_s0 + $0x1] ss:$0 sm:$0xff]  ;;  %v72_v2 = vld [vmem:[%s202_s0 + $0x2] ss:$0 sm:$0xff] }
   0x2   :  { %5 = vst [vmem:[%s203_s1] sm:$0x3] %v4_v0  ;;  %66 = vst [vmem:[%s203_s1 + $0x10] sm:$0x3] %v4_v0  ;;  %v76_v3 = vld [vmem:[%s202_s0 + $0x3] ss:$0 sm:$0xff] }
   0x3   :  { %67 = vst [vmem:[%s203_s1 + $0x20] sm:$0x3] %v4_v0  ;;  %69 = vst [vmem:[%s203_s1 + $0x2] sm:$0x3] %v68_v1  ;;  %v80_v4 = vld [vmem:[%s202_s0 + $0x4] ss:$0 sm:$0xff] }
   0x4   :  { %70 = vst [vmem:[%s203_s1 + $0x12] sm:$0x3] %v68_v1  ;;  %71 = vst [vmem:[%s203_s1 + $0x22] sm:$0x3] %v68_v1  ;;  %v84_v5 = vld [vmem:[%s202_s0 + $0x5] ss:$0 sm:$0xff] }
   0x5   :  { %73 = vst [vmem:[%s203_s1 + $0x4] sm:$0x3] %v72_v2  ;;  %74 = vst [vmem:[%s203_s1 + $0x14] sm:$0x3] %v72_v2  ;;  %v88_v6 = vld [vmem:[%s202_s0 + $0x6] ss:$0 sm:$0xff] }
   0x6   :  { %75 = vst [vmem:[%s203_s1 + $0x24] sm:$0x3] %v72_v2  ;;  %77 = vst [vmem:[%s203_s1 + $0x6] sm:$0x3] %v76_v3  ;;  %v92_v7 = vld [vmem:[%s202_s0 + $0x7] ss:$0 sm:$0xff] }
   0x7   :  { %78 = vst [vmem:[%s203_s1 + $0x16] sm:$0x3] %v76_v3  ;;  %79 = vst [vmem:[%s203_s1 + $0x26] sm:$0x3] %v76_v3 }
   0x8   :  { %81 = vst [vmem:[%s203_s1 + $0x8] sm:$0x3] %v80_v4  ;;  %82 = vst [vmem:[%s203_s1 + $0x18] sm:$0x3] %v80_v4 }
   0x9   :  { %83 = vst [vmem:[%s203_s1 + $0x28] sm:$0x3] %v80_v4  ;;  %85 = vst [vmem:[%s203_s1 + $0xa] sm:$0x3] %v84_v5 }
   0xa   :  { %86 = vst [vmem:[%s203_s1 + $0x1a] sm:$0x3] %v84_v5  ;;  %87 = vst [vmem:[%s203_s1 + $0x2a] sm:$0x3] %v84_v5 }
   0xb   :  { %89 = vst [vmem:[%s203_s1 + $0xc] sm:$0x3] %v88_v6  ;;  %90 = vst [vmem:[%s203_s1 + $0x1c] sm:$0x3] %v88_v6 }
   0xc   :  { %91 = vst [vmem:[%s203_s1 + $0x2c] sm:$0x3] %v88_v6  ;;  %93 = vst [vmem:[%s203_s1 + $0xe] sm:$0x3] %v92_v7 }
   0xd   :  { %94 = vst [vmem:[%s203_s1 + $0x1e] sm:$0x3] %v92_v7  ;;  %95 = vst [vmem:[%s203_s1 + $0x2e] sm:$0x3] %v92_v7 }

// kernel: trans_matcher_forward.1
= control target key start
LH: loop header
LB: loop body
LE: loop exit
PB: predicated region body
PF: predicated region fallthrough
CT: control target
= control target key end

     0   :  { %vm35_vm0 = vcmask 261120   ;;  %v1732_v0 = vmov 0.0|0.0   ;;  %vm1733_vm1 = vmmov 0   ;;  %v1734_v4 = vmov 0.0   ;;  %s1735_s17 = smov 112   ;;  %s1736_s18 = smov 120   ;;  %s2086_s2 = inlined_call_operand.vmem [shape: f32[2,96,128], index: 2, kind: input, shape index: {}]   ;;  %s2087_s0 = inlined_call_operand.vmem [shape: f32[2,16,32], index: 0, kind: input, shape index: {}]   ;;  %s2088_s1 = inlined_call_operand.vmem [shape: f32[2,24,32], index: 1, kind: input, shape index: {}]   ;;  %s2089_s3 = inlined_call_operand.vmem [shape: f32[2,8,128], index: 3, kind: output, shape index: {}]  }
   0x1   :  { %1677 = vmatprep.subr.bf16.mxu1 %v1732_v0  ;;  %v14_v1 = vld [vmem:[%s2086_s2] sm:$0xff]  ;;  %v15_v2 = vld [vmem:[%s2086_s2 + $0x8] sm:$0xff]  ;;  %v16_v3 = vld [vmem:[%s2086_s2 + $0x10] sm:$0xff]  ;;  %1564 = vmatprep.mubr.msk.f32.mxu1 %vm1733_vm1, %v1734_v4  ;;  %vm386_vm3 = vcmask 130048   ;;  %vm444_vm4 = vcmask 195584   ;;  %v384_v51 = vlaneseq  ;;  %vm483_vm6 = vcmask 1040384  }
   0x2   :  { %v1669_v5 = vpack.c.bf16 %v15_v2, %v14_v1  ;;  %v17_v6 = vld [vmem:[%s2086_s2 + $0x18] sm:$0xff]  ;;  %v29_v7 = vld [vmem:[%s2087_s0] sm:$0xff]  ;;  %v30_v10 = vld [vmem:[%s2087_s0 + $0x8] sm:$0xff]  ;;  %vm485_vm10 = vcmask 1041408   ;;  %s1737_s5 = smov 24  }
   0x3   :  { %v1673_v8 = vpack.c.bf16 %v17_v6, %v16_v3  ;;  %1553 = vmatprep.mubr.msk.f32.mxu0 %vm35_vm0, %v29_v7  ;;  %v117_v9 = vld [vmem:[%s2088_s1] sm:$0xff]  ;;  %v118_v11 = vld [vmem:[%s2088_s1 + $0x8] sm:$0xff]  ;;  %v119_v12 = vld [vmem:[%s2088_s1 + $0x10] sm:$0xff]  ;;  %v1854_v2 = vshrl.u32 %v384_v51, 7 }
   0x4   :  { %1670 = vmatprep.subr.bf16.mxu0 %v1669_v5  ;;  %1679 = vmatpush3.bf16.msra.mxu1 %v1669_v5  ;;  %v1418_v13 = vld [vmem:[%s2086_s2 + $0x20] ss:$0 sm:$0xff]  ;;  %vm1807_vm2 = vmpackc.low %vm35_vm0, %vm35_vm0  ;;  %v19_v30 = vld [vmem:[%s2086_s2 + $0x28] sm:$0xff] }
   0x5   :  { %1672 = vmatpush3.bf16.msra.mxu0 %v1669_v5  ;;  %1680 = vmatprep.subr.bf16.mxu1 %v1732_v0  ;;  %v20_v34 = vld [vmem:[%s2086_s2 + $0x30] sm:$0xff]  ;;  %v23_v40 = vld [vmem:[%s2086_s2 + $0x48] sm:$0xff]  ;;  %v21_v42 = vld [vmem:[%s2086_s2 + $0x38] sm:$0xff] }
   0x6   :  { %1674 = vmatprep.subr.bf16.mxu0 %v1673_v8  ;;  %v22_v43 = vld [vmem:[%s2086_s2 + $0x40] sm:$0xff]  ;;  %v1448_v22 = vld [vmem:[%s2086_s2 + $0x90] sm:$0xff] }
   0x8   :  { %1682 = vmatpush3.bf16.msra.mxu1 %v1673_v8 }
   0x9   :  { %1676 = vmatpush3.bf16.msra.mxu0 %v1673_v8 }
   0xa   :  { %1683 = vmatprep.subr.bf16.mxu0 %v1732_v0 }
   0xb   :  { %1565 = vmatmul.mubr.msk.f32.vlgmr.msra.gmra.mrb[0].mxu1 %vm35_vm0, %v117_v9 }
   0xc   :  { %1554 = vmatmul.mubr.msk.f32.vlgmr.msra.gmra.mrb[0].mxu0 %vm35_vm0, %v30_v10  ;;  %1567 = vmatprep.mubr.msk.f32.mxu1 %vm1733_vm1, %v1734_v4 }
   0xd   :  { %1577 = vmatprep.mubr.msk.f32.mxu0 %vm1733_vm1, %v1734_v4 }
   0xf   :  { %1568 = vmatmul.mubr.msk.f32.gmra.mrb[2].mxu1 %vm35_vm0, %v118_v11 }
  0x10   :  { %1570 = vmatprep.mubr.msk.f32.mxu1 %vm1733_vm1, %v1734_v4 }
  0x13   :  { %1571 = vmatmul.mubr.msk.f32.gmra.mrb[4].mxu1 %vm35_vm0, %v119_v12 }
  0xde   :  { %v195_v14 = vpop.f32.mrb[0].mxu1 }
  0xdf   :  { %v1555_v15 = vpop.f32.mrb[0].mxu0  ;;  %v1566_v16 = vpop.f32.mrb[1].mxu1  ;;  %v196_v20 = vadd.f32 %v1418_v13, %v195_v14 }
  0xe0   :  { %v114_v17 = vadd.f32 %v1555_v15, %v1418_v13  ;;  %v108_v18 = vpop.f32.mrb[1].mxu0 }
  0xe1   :  { %v109_v19 = vadd.f32 %v1418_v13, %v108_v18 }
  0xe2   :  { %v200_v21 = vpop.f32.mrb[2].mxu1 }
  0xe3   :  { %v1684_v23 = vpack.c.bf16 %v114_v17, %v109_v19  ;;  %v201_v24 = vadd.f32 %v1418_v13, %v200_v21  ;;  %1592 = vmatprep.mubr.msk.f32.mxu1 %vm35_vm0, %v109_v19  ;;  %v1569_v25 = vpop.f32.mrb[3].mxu1 }
  0xe5   :  { %v1687_v26 = vpack.c.bf16 %v201_v24, %v196_v20  ;;  %1686 = vmatpush3.bf16.xpose.msk.msra.mxu0 %vm1807_vm2, %v1684_v23 }
  0xe6   :  { %v205_v27 = vpop.f32.mrb[4].mxu1  ;;  %1693 = vmatprep.subr.bf16.mxu0 %v1732_v0 }
  0xe7   :  { %1689 = vmatprep.subr.msk.bf16.mxu1 %vm1807_vm2, %v1687_v26  ;;  %v206_v28 = vadd.f32 %v1418_v13, %v205_v27  ;;  %v1572_v29 = vpop.f32.mrb[5].mxu1  ;;  %v24_v27 = vld [vmem:[%s2086_s2 + $0x50] sm:$0xff] }
  0xe8   :  { %1692 = vmatpush3.bf16.xpose.msk.msra.mxu1 %vm1807_vm2, %v1687_v26 }
  0xe9   :  { %1590 = vmatprep.subr.msk.mxu1 %vm35_vm0, %v206_v28 }
  0xec   :  { %1578 = vmatmul.mubr.msk.f32.vlgmr.msra.gmra.mrb[2].mxu0 %vm35_vm0, %v196_v20 }
  0xed   :  { %1580 = vmatprep.mubr.msk.f32.mxu0 %vm1733_vm1, %v1734_v4 }
  0xf0   :  { %1581 = vmatmul.mubr.msk.f32.gmra.mrb[4].mxu0 %vm35_vm0, %v201_v24  ;;  %1591 = vmatpush3.xpose.msk.msra.mxu1 %vm35_vm0, %v206_v28 }
  0xf1   :  { %1583 = vmatprep.mubr.msk.f32.mxu0 %vm1733_vm1, %v1734_v4  ;;  %1595 = vmatprep.subr.mxu1 %v24_v27 }
  0xf3   :  { %1593 = vmatmul.mubr.msk.f32.vlgmr.msra.gmra.mrb[6].mxu1 %vm35_vm0, %v114_v17 }
  0xf4   :  { %1584 = vmatmul.mubr.msk.f32.gmra.mrb[6].mxu0 %vm35_vm0, %v206_v28  ;;  %1596 = vmatpush3.msra.mxu1 %v24_v27  ;;  %v1458_v27 = vld [vmem:[%s2087_s0 + $0x18] sm:$0xff] }
  0xf5   :  { %1604 = vmatprep.mubr.msk.f32.mxu0 %vm1733_vm1, %v1734_v4 }
 0x1bf   :  { %v290_v31 = vpop.f32.mrb[2].mxu0 }
 0x1c0   :  { %v304_v32 = vmul.f32 %v290_v31, %v19_v30  ;;  %v1579_v33 = vpop.f32.mrb[3].mxu0 }
 0x1c2   :  { %v387_v35 = vsel %vm386_vm3, %v304_v32, -inf }
 0x1c3   :  { %v388_v36 = vrot.slane %v387_v35, 4  ;;  %v295_v37 = vpop.f32.mrb[4].mxu0 }
 0x1c4   :  { %v305_v38 = vmul.f32 %v295_v37, %v20_v34  ;;  %v1582_v39 = vpop.f32.mrb[5].mxu0 }
 0x1c5   :  { %v389_v41 = vmax.f32 %v387_v35, %v388_v36 }
 0x1c6   :  { %v406_v44 = vsel %vm386_vm3, %v305_v38, -inf  ;;  %v1594_v45 = vpop.f32.mrb[6].mxu1 }
 0x1c7   :  { %v390_v46 = vrot.slane %v389_v41, 2  ;;  %v407_v47 = vrot.slane %v406_v44, 4  ;;  %v383_v48 = vmul.f32 %v1594_v45, %v23_v40  ;;  %v300_v49 = vpop.f32.mrb[6].mxu0  ;;  %v373_v50 = vpop.f32.mrb[7].mxu1 }
 0x1c8   :  { %v306_v52 = vmul.f32 %v300_v49, %v21_v42  ;;  %v1848_v53 = vmul.f32 %v373_v50, %v22_v43  ;;  %v1585_v54 = vpop.f32.mrb[7].mxu0 }
 0x1c9   :  { %v391_v55 = vmax.f32 %v389_v41, %v390_v46  ;;  %v408_v56 = vmax.f32 %v406_v44, %v407_v47  ;;  %v464_v57 = vsel %vm444_vm4, %v383_v48, -inf }
 0x1ca   :  { %v465_v58 = vrot.slane %v464_v57, 4  ;;  %v425_v59 = vsel %vm386_vm3, %v306_v52, -inf  ;;  %v445_v60 = vsel %vm444_vm4, %v1848_v53, -inf }
 0x1cb   :  { %v392_v61 = vrot.slane %v391_v55, 1  ;;  %v409_v62 = vrot.slane %v408_v56, 2  ;;  %v426_v63 = vrot.slane %v425_v59, 4  ;;  %v446_v1 = vrot.slane %v445_v60, 4 }
 0x1cc   :  { %v466_v3 = vmax.f32 %v464_v57, %v465_v58 }
 0x1cd   :  { %v393_v5 = vmax.f32 %v391_v55, %v392_v61  ;;  %v410_v6 = vmax.f32 %v408_v56, %v409_v62  ;;  %v427_v7 = vmax.f32 %v425_v59, %v426_v63  ;;  %v447_v8 = vmax.f32 %v445_v60, %v446_v1 }
 0x1ce   :  { %v467_v9 = vrot.slane %v466_v3, 2 }
 0x1cf   :  { %vm394_vm5 = vcmp.eq.f32.partialorder %v304_v32, %v393_v5  ;;  %v411_v10 = vrot.slane %v410_v6, 1  ;;  %v428_v11 = vrot.slane %v427_v7, 2  ;;  %v448_v12 = vrot.slane %v447_v8, 2 }
 0x1d0   :  { %v395_v13 = vsel %vm394_vm5, %v1854_v2, 8  ;;  %v468_v14 = vmax.f32 %v466_v3, %v467_v9 }
 0x1d1   :  { %v396_v15 = vsel %vm386_vm3, %v395_v13, 2147483647  ;;  %v412_v16 = vmax.f32 %v410_v6, %v411_v10  ;;  %v429_v17 = vmax.f32 %v427_v7, %v428_v11  ;;  %v449_v18 = vmax.f32 %v447_v8, %v448_v12 }
 0x1d2   :  { %v397_v19 = vrot.slane %v396_v15, 4  ;;  %v469_v20 = vrot.slane %v468_v14, 1 }
 0x1d3   :  { %vm413_vm7 = vcmp.eq.f32.partialorder %v305_v38, %v412_v16  ;;  %v430_v21 = vrot.slane %v429_v17, 1  ;;  %v450_v23 = vrot.slane %v449_v18, 1  ;;  %v484_v24 = vsel %vm483_vm6, %v393_v5, %v412_v16 }
 0x1d4   :  { %vm398_vm8 = vcmp.lt.s32.totalorder %v396_v15, %v397_v19  ;;  %v414_v25 = vsel %vm413_vm7, %v1854_v2, 8  ;;  %v470_v26 = vmax.f32 %v468_v14, %v469_v20  ;;  %v1443_v20 = vld [vmem:[%s2086_s2 + $0x68] sm:$0xff] }
 0x1d5   :  { %v399_v28 = vsel %vm398_vm8, %v396_v15, %v397_v19  ;;  %v415_v29 = vsel %vm386_vm3, %v414_v25, 2147483647  ;;  %v431_v30 = vmax.f32 %v429_v17, %v430_v21  ;;  %v451_v31 = vmax.f32 %v449_v18, %v450_v23  ;;  %v1442_v19 = vld [vmem:[%s2086_s2 + $0x60] sm:$0xff]  ;;  %v1444_v23 = vld [vmem:[%s2086_s2 + $0x70] sm:$0xff] }
 0x1d6   :  { %v400_v32 = vrot.slane %v399_v28, 2  ;;  %v416_v33 = vrot.slane %v415_v29, 4  ;;  %vm471_vm9 = vcmp.eq.f32.partialorder %v383_v48, %v470_v26  ;;  %v1697_v21 = vpack.c.bf16 %v1443_v20, %v1442_v19 }
 0x1d7   :  { %v472_v34 = vsel %vm471_vm9, %v1854_v2, 8  ;;  %vm432_vm11 = vcmp.eq.f32.partialorder %v306_v52, %v431_v30  ;;  %vm452_vm12 = vcmp.eq.f32.partialorder %v1848_v53, %v451_v31  ;;  %v1867_v35 = vsel %vm483_vm6, %v451_v31, %v470_v26  ;;  %v1457_v26 = vld [vmem:[%s2087_s0 + $0x10] sm:$0xff] }
 0x1d8   :  { %vm401_vm13 = vcmp.lt.s32.totalorder %v399_v28, %v400_v32  ;;  %vm417_vm14 = vcmp.lt.s32.totalorder %v415_v29, %v416_v33  ;;  %v473_v36 = vsel %vm444_vm4, %v472_v34, 2147483647  ;;  %v433_v37 = vsel %vm432_vm11, %v1854_v2, 8  ;;  %1698 = vmatprep.subr.bf16.mxu1 %v1697_v21 }
 0x1d9   :  { %v402_v38 = vsel %vm401_vm13, %v399_v28, %v400_v32  ;;  %v418_v39 = vsel %vm417_vm14, %v415_v29, %v416_v33  ;;  %v474_v40 = vrot.slane %v473_v36, 4  ;;  %v434_v41 = vsel %vm386_vm3, %v433_v37, 2147483647  ;;  %v1434_v28 = vld [vmem:[%s2086_s2 + $0x58] ss:$0 sm:$0xff] }
 0x1da   :  { %v403_v42 = vrot.slane %v402_v38, 1  ;;  %v419_v43 = vrot.slane %v418_v39, 2  ;;  %v435_v44 = vrot.slane %v434_v41, 4  ;;  %v453_v45 = vsel %vm452_vm12, %v1854_v2, 8  ;;  %v1437_v29 = vld [vmem:[%s2086_s2 + $0x59] ss:$0 sm:$0xff] }
 0x1db   :  { %vm475_vm15 = vcmp.lt.s32.totalorder %v473_v36, %v474_v40  ;;  %v454_v46 = vsel %vm444_vm4, %v453_v45, 2147483647  ;;  %v504_v47 = vrot.slane %v1867_v35, 6  ;;  %v1876_v48 = vsel %vm485_vm10, %v484_v24, %v431_v30  ;;  %v1445_v24 = vld [vmem:[%s2086_s2 + $0x78] sm:$0xff] }
 0x1dc   :  { %vm420_vm5 = vcmp.lt.s32.totalorder %v418_v39, %v419_v43  ;;  %v476_v49 = vsel %vm475_vm15, %v473_v36, %v474_v40  ;;  %vm436_vm7 = vcmp.lt.s32.totalorder %v434_v41, %v435_v44  ;;  %v455_v50 = vrot.slane %v454_v46, 4  ;;  %v1438_v33 = vld [vmem:[%s2086_s2 + $0x5a] ss:$0 sm:$0xff] }
 0x1dd   :  { %v421_v51 = vsel %vm420_vm5, %v418_v39, %v419_v43  ;;  %v477_v52 = vrot.slane %v476_v49, 2  ;;  %v437_v53 = vsel %vm436_vm7, %v434_v41, %v435_v44  ;;  %505 = vrot.lane.b32.xlu1 %v504_v47, %s1735_s17  ;;  %v494_v54 = vrot.slane %v1876_v48, 5  ;;  %v28_v44 = vld [vmem:[%s2086_s2 + $0x5b] sm:$0x1]  ;;  %v1464_v47 = vld [vmem:[%s2088_s1 + $0x28] sm:$0xff] }
 0x1de   :  { %v422_v55 = vrot.slane %v421_v51, 1  ;;  %v438_v56 = vrot.slane %v437_v53, 2  ;;  %vm456_vm8 = vcmp.lt.s32.totalorder %v454_v46, %v455_v50  ;;  %vm404_vm11 = vcmp.lt.s32.totalorder %v402_v38, %v403_v42  ;;  %v1462_v45 = vld [vmem:[%s2088_s1 + $0x18] sm:$0xff] }
 0x1df   :  { %vm478_vm9 = vcmp.lt.s32.totalorder %v476_v49, %v477_v52  ;;  %v457_v57 = vsel %vm456_vm8, %v454_v46, %v455_v50  ;;  %495 = vrot.lane.b32.xlu0 %v494_v54, %s1736_s18  ;;  %v405_v62 = vsel %vm404_vm11, %v402_v38, %v403_v42  ;;  %vm508_vm8 = vcmask 1042432   ;;  %v1463_v46 = vld [vmem:[%s2088_s1 + $0x20] sm:$0xff] }
 0x1e0   :  { %vm439_vm12 = vcmp.lt.s32.totalorder %v437_v53, %v438_v56  ;;  %v458_v58 = vrot.slane %v457_v57, 2  ;;  %v479_v59 = vsel %vm478_vm9, %v476_v49, %v477_v52  ;;  %vm423_vm13 = vcmp.lt.s32.totalorder %v421_v51, %v422_v55  ;;  %v1459_v49 = vld [vmem:[%s2086_s2 + $0x80] ss:$0 sm:$0xff] }
 0x1e1   :  { %v480_v60 = vrot.slane %v479_v59, 1  ;;  %v440_v61 = vsel %vm439_vm12, %v437_v53, %v438_v56  ;;  %v424_v63 = vsel %vm423_vm13, %v421_v51, %v422_v55  ;;  %vm510_vm9 = vcmask 1045504  }
 0x1e2   :  { %vm459_vm14 = vcmp.lt.s32.totalorder %v457_v57, %v458_v58  ;;  %v441_v1 = vrot.slane %v440_v61, 1  ;;  %v487_v5 = vsel %vm483_vm6, %v405_v62, %v424_v63  ;;  %v499_v13 = vrot.slane %v1867_v35, 2 }
 0x1e3   :  { %501 = vrot.lane.b32.xlu0 %v1867_v35, %s1736_s18  ;;  %v460_v3 = vsel %vm459_vm14, %v457_v57, %v458_v58  ;;  %vm481_vm15 = vcmp.lt.s32.totalorder %v479_v59, %v480_v60  ;;  %vm517_vm11 = vcmask 64512   ;;  %v1701_v25 = vpack.c.bf16 %v1445_v24, %v1444_v23 }
 0x1e4   :  { %v461_v6 = vrot.slane %v460_v3, 1  ;;  %vm442_vm5 = vcmp.lt.s32.totalorder %v440_v61, %v441_v1  ;;  %v482_v7 = vsel %vm481_vm15, %v479_v59, %v480_v60  ;;  %vm613_vm12 = vcmask 523264  }
 0x1e5   :  { %v443_v8 = vsel %vm442_vm5, %v440_v61, %v441_v1  ;;  %vm1931_vm13 = vmpackc.low %vm613_vm12, %vm613_vm12 }
 0x1e6   :  { %vm462_vm7 = vcmp.lt.s32.totalorder %v460_v3, %v461_v6  ;;  %v1885_v9 = vsel %vm485_vm10, %v487_v5, %v443_v8  ;;  %v1447_v5 = vld [vmem:[%s2086_s2 + $0x88] sm:$0xff] }
 0x1e7   :  { %v463_v10 = vsel %vm462_vm7, %v460_v3, %v461_v6 }
 0x1e8   :  { %v1888_v11 = vsel %vm483_vm6, %v463_v10, %v482_v7 }
 0x24f   :  { %v506_v16 = vpop.permute.xlu1 %505 }
 0x251   :  { %v496_v12 = vpop.permute.xlu0 %495 }
 0x252   :  { %v509_v14 = vsel %vm508_vm8, %v1876_v48, %v496_v12 }
 0x253   :  { %v511_v15 = vsel %vm510_vm9, %v509_v14, %v499_v13 }
 0x254   :  { %1597 = vmatprep.mubr.msk.f32.mxu1 %vm517_vm11, %v511_v15 }
 0x255   :  { %v502_v17 = vpop.permute.xlu0 %501 }
 0x256   :  { %v512_v18 = vsel %vm485_vm10, %v502_v17, %v506_v16  ;;  %v1449_v16 = vld [vmem:[%s2086_s2 + $0x98] sm:$0xff] }
 0x257   :  { %1598 = vmatmul.mubr.msk.f32.vlgmr.msra.gmra.mrb[8].mxu1 %vm517_vm11, %v512_v18 }
 0x258   :  { %1700 = vmatpush3.bf16.msra.mxu1 %v1697_v21  ;;  %1615 = vmatprep.mubr.msk.f32.mxu1 %vm35_vm0, %v1457_v26 }
 0x259   :  { %1702 = vmatprep.subr.bf16.mxu1 %v1701_v25 }
 0x25c   :  { %1704 = vmatpush3.bf16.msra.mxu1 %v1701_v25 }
 0x25d   :  { %1711 = vmatprep.subr.bf16.mxu1 %v1732_v0 }
 0x25f   :  { %1616 = vmatmul.mubr.msk.f32.vlgmr.msra.gmra.mrb[10].mxu1 %vm35_vm0, %v1458_v27 }
 0x260   :  { %1639 = vmatprep.mubr.msk.f32.mxu1 %vm1733_vm1, %v1734_v4 }
 0x32a   :  { %v1599_v30 = vpop.f32.mrb[8].mxu1 }
 0x32b   :  { %v596_v31 = vadd.f32 %v1599_v30, %v1434_v28  ;;  %v590_v32 = vpop.f32.mrb[9].mxu1 }
 0x32c   :  { %v591_v34 = vadd.f32 %v1434_v28, %v590_v32 }
 0x32d   :  { %v604_v36 = vmul.f32 %v1437_v29, %v596_v31 }
 0x32e   :  { %v603_v37 = vmul.f32 %v1437_v29, %v591_v34 }
 0x32f   :  { %v610_v38 = vadd.f32 %v1438_v33, %v604_v36  ;;  %v1451_v36 = vld [vmem:[%s2086_s2 + $0xa8] sm:$0xff] }
 0x330   :  { %v609_v39 = vadd.f32 %v1438_v33, %v603_v37 }
 0x331   :  { %v612_v40 = vmax.f32 %v610_v38, 0.0  ;;  %v1450_v38 = vld [vmem:[%s2086_s2 + $0xa0] sm:$0xff] }
 0x332   :  { %v611_v41 = vmax.f32 %v609_v39, 0.0  ;;  %v1617_v50 = vpop.f32.mrb[10].mxu1 }
 0x333   :  { %v820_v51 = vadd.f32 %v1617_v50, %v1459_v49  ;;  %v814_v52 = vpop.f32.mrb[11].mxu1 }
 0x334   :  { %v1694_v43 = vpack.c.bf16 %v612_v40, %v611_v41  ;;  %v815_v53 = vadd.f32 %v1459_v49, %v814_v52 }
 0x336   :  { %1696 = vmatpush3.bf16.xpose.msk.msra.mxu0 %vm1931_vm13, %v1694_v43  ;;  %v1712_v54 = vpack.c.bf16 %v820_v51, %v815_v53 }
 0x337   :  { %1705 = vmatprep.subr.bf16.mxu0 %v1732_v0 }
 0x338   :  { %1714 = vmatpush3.bf16.xpose.msk.msra.mxu1 %vm1807_vm2, %v1712_v54 }
 0x339   :  { %1721 = vmatprep.subr.bf16.mxu1 %v1732_v0 }
 0x33d   :  { %1605 = vmatmul.mubr.msk.f32.vlgmr.msra.gmra.mrb[8].mxu0 %vm613_vm12, %v28_v44 }
 0x33e   :  { %1707 = vmatpush3.bf16.msra.mxu0 %v1697_v21  ;;  %1626 = vmatprep.mubr.msk.f32.mxu0 %vm1733_vm1, %v1734_v4 }
 0x33f   :  { %1708 = vmatprep.subr.bf16.mxu0 %v1732_v0 }
 0x342   :  { %1710 = vmatpush3.bf16.msra.mxu0 %v1701_v25 }
 0x345   :  { %1627 = vmatmul.mubr.msk.f32.vlgmr.msra.gmra.mrb[10].mxu0 %vm35_vm0, %v1462_v45 }
 0x346   :  { %1629 = vmatprep.mubr.msk.f32.mxu0 %vm1733_vm1, %v1734_v4 }
 0x349   :  { %1630 = vmatmul.mubr.msk.f32.gmra.mrb[12].mxu0 %vm35_vm0, %v1463_v46 }
 0x34a   :  { %1632 = vmatprep.mubr.msk.f32.mxu0 %vm1733_vm1, %v1734_v4 }
 0x34d   :  { %1633 = vmatmul.mubr.msk.f32.gmra.mrb[14].mxu0 %vm35_vm0, %v1464_v47 }
 0x34e   :  { %1654 = vmatprep.mubr.msk.f32.mxu0 %vm35_vm0, %v815_v53 }
 0x410   :  { %v1968_v55 = vpop.f32.mrb[8].mxu0 }
 0x411   :  { %v1606_v56 = vpop.f32.mrb[9].mxu0 }
 0x418   :  { %v902_v57 = vpop.f32.mrb[10].mxu0 }
 0x419   :  { %v903_v58 = vadd.f32 %v1459_v49, %v902_v57  ;;  %v1628_v59 = vpop.f32.mrb[11].mxu0 }
 0x41b   :  { %1640 = vmatmul.mubr.msk.f32.vlgmr.msra.gmra.mrb[12].mxu1 %vm35_vm0, %v903_v58 }
 0x41c   :  { %v907_v60 = vpop.f32.mrb[12].mxu0  ;;  %1642 = vmatprep.mubr.msk.f32.mxu1 %vm1733_vm1, %v1734_v4 }
 0x41d   :  { %v908_v61 = vadd.f32 %v1459_v49, %v907_v60  ;;  %v1631_v62 = vpop.f32.mrb[13].mxu0 }
 0x41f   :  { %v1715_v63 = vpack.c.bf16 %v908_v61, %v903_v58  ;;  %1643 = vmatmul.mubr.msk.f32.gmra.mrb[14].mxu1 %vm35_vm0, %v908_v61 }
 0x420   :  { %v912_v1 = vpop.f32.mrb[14].mxu0  ;;  %1645 = vmatprep.mubr.msk.f32.mxu1 %vm1733_vm1, %v1734_v4 }
 0x421   :  { %v913_v0 = vadd.f32 %v1459_v49, %v912_v1  ;;  %1717 = vmatprep.subr.msk.bf16.mxu0 %vm1807_vm2, %v1715_v63  ;;  %v1634_v3 = vpop.f32.mrb[15].mxu0  ;;  %v1452_v1 = vld [vmem:[%s2086_s2 + $0xb0] sm:$0xff] }
 0x422   :  { %1720 = vmatpush3.bf16.xpose.msk.msra.mxu0 %vm1807_vm2, %v1715_v63 }
 0x423   :  { %1646 = vmatmul.mubr.msk.f32.gmra.mrb[16].mxu1 %vm35_vm0, %v913_v0  ;;  %1652 = vmatprep.subr.msk.mxu0 %vm35_vm0, %v913_v0 }
 0x424   :  { %1666 = vmatprep.mubr.msk.f32.mxu1 %vm1733_vm1, %v1734_v4 }
 0x42a   :  { %1653 = vmatpush3.xpose.msk.msra.mxu0 %vm35_vm0, %v913_v0 }
 0x42b   :  { %1657 = vmatprep.subr.mxu0 %v1452_v1 }
 0x42d   :  { %1655 = vmatmul.mubr.msk.f32.vlgmr.msra.gmra.mrb[16].mxu0 %vm35_vm0, %v820_v51 }
 0x42e   :  { %1658 = vmatpush3.msra.mxu0 %v1452_v1 }
 0x4ee   :  { %v997_v6 = vpop.f32.mrb[12].mxu1 }
 0x4ef   :  { %v1011_v7 = vmul.f32 %v1447_v5, %v997_v6  ;;  %v1641_v8 = vpop.f32.mrb[13].mxu1 }
 0x4f1   :  { %v1091_v10 = vsel %vm386_vm3, %v1011_v7, -inf }
 0x4f2   :  { %v1092_v12 = vrot.slane %v1091_v10, 4  ;;  %v1002_v13 = vpop.f32.mrb[14].mxu1 }
 0x4f3   :  { %v1012_v4 = vmul.f32 %v1448_v22, %v1002_v13  ;;  %v1644_v14 = vpop.f32.mrb[15].mxu1 }
 0x4f4   :  { %v1093_v15 = vmax.f32 %v1091_v10, %v1092_v12 }
 0x4f5   :  { %v1110_v17 = vsel %vm386_vm3, %v1012_v4, -inf }
 0x4f6   :  { %v1094_v18 = vrot.slane %v1093_v15, 2  ;;  %v1111_v19 = vrot.slane %v1110_v17, 4  ;;  %v1007_v20 = vpop.f32.mrb[16].mxu1 }
 0x4f7   :  { %v1013_v21 = vmul.f32 %v1449_v16, %v1007_v20  ;;  %v1647_v23 = vpop.f32.mrb[17].mxu1 }
 0x4f8   :  { %v1095_v24 = vmax.f32 %v1093_v15, %v1094_v18  ;;  %v1112_v25 = vmax.f32 %v1110_v17, %v1111_v19 }
 0x4f9   :  { %v1129_v26 = vsel %vm386_vm3, %v1013_v21, -inf }
 0x4fa   :  { %v1096_v27 = vrot.slane %v1095_v24, 1  ;;  %v1113_v28 = vrot.slane %v1112_v25, 2  ;;  %v1130_v29 = vrot.slane %v1129_v26, 4 }
 0x4fc   :  { %v1097_v30 = vmax.f32 %v1095_v24, %v1096_v27  ;;  %v1114_v31 = vmax.f32 %v1112_v25, %v1113_v28  ;;  %v1131_v32 = vmax.f32 %v1129_v26, %v1130_v29 }
 0x4fe   :  { %vm1098_vm1 = vcmp.eq.f32.partialorder %v1011_v7, %v1097_v30  ;;  %v1115_v33 = vrot.slane %v1114_v31, 1  ;;  %v1132_v34 = vrot.slane %v1131_v32, 2 }
 0x4ff   :  { %v1099_v37 = vsel %vm1098_vm1, %v1854_v2, 8 }
 0x500   :  { %v1100_v39 = vsel %vm386_vm3, %v1099_v37, 2147483647  ;;  %v1116_v40 = vmax.f32 %v1114_v31, %v1115_v33  ;;  %v1133_v41 = vmax.f32 %v1131_v32, %v1132_v34  ;;  %v1656_v43 = vpop.f32.mrb[16].mxu0 }
 0x501   :  { %v1101_v44 = vrot.slane %v1100_v39, 4  ;;  %v1090_v45 = vmul.f32 %v1656_v43, %v1451_v36  ;;  %v1080_v46 = vpop.f32.mrb[17].mxu0  ;;  %v492_v43 = vcvt.s32.f32 %v1888_v11 }
 0x502   :  { %vm1117_vm2 = vcmp.eq.f32.partialorder %v1012_v4, %v1116_v40  ;;  %v1134_v47 = vrot.slane %v1133_v41, 1  ;;  %v1089_v49 = vmul.f32 %v1450_v38, %v1080_v46  ;;  %v1186_v50 = vsel %vm483_vm6, %v1097_v30, %v1116_v40 }
 0x503   :  { %vm1102_vm14 = vcmp.lt.s32.totalorder %v1100_v39, %v1101_v44  ;;  %v1118_v51 = vsel %vm1117_vm2, %v1854_v2, 8  ;;  %v1167_v52 = vsel %vm444_vm4, %v1090_v45, -inf  ;;  %v489_v46 = vcvt.s32.f32 %v1885_v9 }
 0x504   :  { %v1103_v53 = vsel %vm1102_vm14, %v1100_v39, %v1101_v44  ;;  %v1119_v54 = vsel %vm386_vm3, %v1118_v51, 2147483647  ;;  %v1135_v56 = vmax.f32 %v1133_v41, %v1134_v47  ;;  %v1168_v57 = vrot.slane %v1167_v52, 4 }
 0x505   :  { %v1104_v58 = vrot.slane %v1103_v53, 2  ;;  %v1120_v59 = vrot.slane %v1119_v54, 4  ;;  %v1148_v60 = vsel %vm444_vm4, %v1089_v49, -inf }
 0x506   :  { %vm1136_vm15 = vcmp.eq.f32.partialorder %v1013_v21, %v1135_v56  ;;  %v1169_v61 = vmax.f32 %v1167_v52, %v1168_v57  ;;  %v1149_v62 = vrot.slane %v1148_v60, 4  ;;  %v2012_v63 = vsel %vm485_vm10, %v1186_v50, %v1135_v56 }
 0x507   :  { %vm1105_vm5 = vcmp.lt.s32.totalorder %v1103_v53, %v1104_v58  ;;  %vm1121_vm7 = vcmp.lt.s32.totalorder %v1119_v54, %v1120_v59  ;;  %v1137_v0 = vsel %vm1136_vm15, %v1854_v2, 8  ;;  %v1195_v3 = vrot.slane %v2012_v63, 5 }
 0x508   :  { %v1106_v5 = vsel %vm1105_vm5, %v1103_v53, %v1104_v58  ;;  %v1122_v6 = vsel %vm1121_vm7, %v1119_v54, %v1120_v59  ;;  %v1138_v7 = vsel %vm386_vm3, %v1137_v0, 2147483647  ;;  %v1170_v8 = vrot.slane %v1169_v61, 2 }
 0x509   :  { %v1107_v22 = vrot.slane %v1106_v5, 1  ;;  %v1123_v10 = vrot.slane %v1122_v6, 2  ;;  %v1139_v12 = vrot.slane %v1138_v7, 4  ;;  %v1150_v13 = vmax.f32 %v1148_v60, %v1149_v62  ;;  %1196 = vrot.lane.b32.xlu1 %v1195_v3, %s1736_s18 }
 0x50a   :  { %v1171_v4 = vmax.f32 %v1169_v61, %v1170_v8 }
 0x50b   :  { %vm1124_vm1 = vcmp.lt.s32.totalorder %v1122_v6, %v1123_v10  ;;  %vm1140_vm2 = vcmp.lt.s32.totalorder %v1138_v7, %v1139_v12  ;;  %v1151_v14 = vrot.slane %v1150_v13, 2  ;;  %vm1108_vm14 = vcmp.lt.s32.totalorder %v1106_v5, %v1107_v22 }
 0x50c   :  { %v1125_v15 = vsel %vm1124_vm1, %v1122_v6, %v1123_v10  ;;  %v1141_v16 = vsel %vm1140_vm2, %v1138_v7, %v1139_v12  ;;  %v1172_v17 = vrot.slane %v1171_v4, 1  ;;  %v1109_v24 = vsel %vm1108_vm14, %v1106_v5, %v1107_v22 }
 0x50d   :  { %v1126_v18 = vrot.slane %v1125_v15, 1  ;;  %v1142_v19 = vrot.slane %v1141_v16, 2  ;;  %v1152_v20 = vmax.f32 %v1150_v13, %v1151_v14 }
 0x50e   :  { %v1173_v21 = vmax.f32 %v1171_v4, %v1172_v17 }
 0x50f   :  { %vm1143_vm15 = vcmp.lt.s32.totalorder %v1141_v16, %v1142_v19  ;;  %v1153_v23 = vrot.slane %v1152_v20, 1  ;;  %vm1127_vm5 = vcmp.lt.s32.totalorder %v1125_v15, %v1126_v18 }
 0x510   :  { %vm1174_vm7 = vcmp.eq.f32.partialorder %v1090_v45, %v1173_v21  ;;  %v1128_v25 = vsel %vm1127_vm5, %v1125_v15, %v1126_v18  ;;  %v1144_v26 = vsel %vm1143_vm15, %v1141_v16, %v1142_v19  ;;  %v1482_v16 = vld [vmem:[%s2086_s2 + $0xba] ss:$0 sm:$0xff] }
 0x511   :  { %v1175_v27 = vsel %vm1174_vm7, %v1854_v2, 8  ;;  %v1154_v28 = vmax.f32 %v1152_v20, %v1153_v23  ;;  %v1145_v29 = vrot.slane %v1144_v26, 1  ;;  %v1188_v30 = vsel %vm483_vm6, %v1109_v24, %v1128_v25 }
 0x512   :  { %v1176_v31 = vsel %vm444_vm4, %v1175_v27, 2147483647 }
 0x513   :  { %v1177_v32 = vrot.slane %v1176_v31, 4  ;;  %vm1155_vm1 = vcmp.eq.f32.partialorder %v1089_v49, %v1154_v28  ;;  %v2025_v33 = vsel %vm483_vm6, %v1154_v28, %v1173_v21  ;;  %vm1146_vm2 = vcmp.lt.s32.totalorder %v1144_v26, %v1145_v29 }
 0x514   :  { %v1156_v34 = vsel %vm1155_vm1, %v1854_v2, 8  ;;  %1202 = vrot.lane.b32.xlu0 %v2025_v33, %s1736_s18  ;;  %v1205_v36 = vrot.slane %v2025_v33, 6  ;;  %v1147_v37 = vsel %vm1146_vm2, %v1144_v26, %v1145_v29  ;;  %s1738_s18 = smov 16   ;;  %v1200_v57 = vrot.slane %v2025_v33, 2  ;;  %v1456_v26 = vld [vmem:[%s2086_s2 + $0xbb] sm:$0x1] }
 0x515   :  { %vm1178_vm14 = vcmp.lt.s32.totalorder %v1176_v31, %v1177_v32  ;;  %v1157_v38 = vsel %vm444_vm4, %v1156_v34, 2147483647  ;;  %v1189_v39 = vsel %vm485_vm10, %v1188_v30, %v1147_v37 }
 0x516   :  { %v1179_v40 = vsel %vm1178_vm14, %v1176_v31, %v1177_v32  ;;  %v1158_v41 = vrot.slane %v1157_v38, 4  ;;  %1206 = vrot.lane.b32.xlu1 %v1205_v36, %s1735_s17  ;;  %v1190_v56 = vcvt.s32.f32 %v1189_v39  ;;  %vm704_vm14 = vcmask 392192  }
 0x517   :  { %v1180_v44 = vrot.slane %v1179_v40, 2 }
 0x518   :  { %vm1159_vm15 = vcmp.lt.s32.totalorder %v1157_v38, %v1158_v41  ;;  %700 = vrot.lane.b32.xlu0 %v492_v43, %s1737_s5 }
 0x519   :  { %vm1181_vm5 = vcmp.lt.s32.totalorder %v1179_v40, %v1180_v44  ;;  %v1160_v2 = vsel %vm1159_vm15, %v1157_v38, %v1158_v41  ;;  %vm715_vm15 = vcmask 1044480  }
 0x51a   :  { %v1161_v45 = vrot.slane %v1160_v2, 2  ;;  %v1182_v47 = vsel %vm1181_vm5, %v1179_v40, %v1180_v44 }
 0x51b   :  { %v1183_v49 = vrot.slane %v1182_v47, 1 }
 0x51c   :  { %vm1162_vm7 = vcmp.lt.s32.totalorder %v1160_v2, %v1161_v45  ;;  %694 = vrot.lane.b32.xlu0 %v489_v46, %s1738_s18 }
 0x51d   :  { %v1163_v50 = vsel %vm1162_vm7, %v1160_v2, %v1161_v45  ;;  %vm1184_vm1 = vcmp.lt.s32.totalorder %v1182_v47, %v1183_v49 }
 0x51e   :  { %v1164_v51 = vrot.slane %v1163_v50, 1  ;;  %v1185_v52 = vsel %vm1184_vm1, %v1182_v47, %v1183_v49 }
 0x520   :  { %vm1165_vm2 = vcmp.lt.s32.totalorder %v1163_v50, %v1164_v51 }
 0x521   :  { %v1166_v11 = vsel %vm1165_vm2, %v1163_v50, %v1164_v51 }
 0x522   :  { %v1192_v53 = vsel %vm483_vm6, %v1166_v11, %v1185_v52  ;;  %vm706_vm6 = vcmask 97280  }
 0x523   :  { %v1193_v54 = vcvt.s32.f32 %v1192_v53  ;;  %v707_v5 = vsel %vm706_vm6, %v1968_v55, 0.0  ;;  %v1478_v55 = vld [vmem:[%s2086_s2 + $0xb8] ss:$0 sm:$0xff] }
 0x524   :  { %v712_v22 = vrot.slane %v707_v5, 3 }
 0x525   :  { %1397 = vrot.lane.b32.xlu1 %v1193_v54, %s1737_s5 }
 0x529   :  { %1391 = vrot.lane.b32.xlu1 %v1190_v56, %s1738_s18 }
 0x57b   :  { %v1197_v9 = vpop.permute.xlu1 %1196 }
 0x57c   :  { %v1209_v58 = vsel %vm508_vm8, %v2012_v63, %v1197_v9 }
 0x57d   :  { %v1210_v59 = vsel %vm510_vm9, %v1209_v58, %v1200_v57 }
 0x57e   :  { %1659 = vmatprep.mubr.msk.f32.mxu0 %vm517_vm11, %v1210_v59 }
 0x586   :  { %v1203_v60 = vpop.permute.xlu0 %1202 }
 0x588   :  { %v1207_v61 = vpop.permute.xlu1 %1206 }
 0x589   :  { %v1211_v62 = vsel %vm485_vm10, %v1203_v60, %v1207_v61 }
 0x58a   :  { %v701_v1 = vpop.permute.xlu0 %700  ;;  %1660 = vmatmul.mubr.msk.f32.vlgmr.msra.gmra.mrb[18].mxu0 %vm517_vm11, %v1211_v62 }
 0x58b   :  { %v703_v0 = vsel %vm444_vm4, %v1867_v35, %v701_v1 }
 0x58c   :  { %v705_v3 = vsel %vm704_vm14, %v703_v0, 0.0 }
 0x58d   :  { %v709_v7 = vrot.slane %v705_v3, 5 }
 0x58e   :  { %v695_v6 = vpop.permute.xlu0 %694 }
 0x58f   :  { %v697_v8 = vsel %vm386_vm3, %v1876_v48, %v695_v6  ;;  %v1481_v48 = vld [vmem:[%s2086_s2 + $0xb9] ss:$0 sm:$0xff] }
 0x590   :  { %v698_v10 = vsel %vm35_vm0, %v697_v8, 0.0 }
 0x591   :  { %v714_v12 = vsel %vm508_vm8, %v698_v10, %v709_v7 }
 0x592   :  { %v716_v13 = vsel %vm715_vm15, %v714_v12, %v712_v22 }
 0x593   :  { %v717_v35 = vsel %vm510_vm9, %v716_v13, 0.0 }
 0x594   :  { %718 = vst [vmem:[%s2089_s3] sm:$0xff] %v717_v35 }
 0x597   :  { %v1398_v27 = vpop.permute.xlu1 %1397 }
 0x598   :  { %v1400_v29 = vsel %vm444_vm4, %v2025_v33, %v1398_v27 }
 0x599   :  { %v1401_v31 = vsel %vm704_vm14, %v1400_v29, 0.0 }
 0x59a   :  { %v1404_v34 = vrot.slane %v1401_v31, 5 }
 0x59b   :  { %v1392_v28 = vpop.permute.xlu1 %1391 }
 0x59c   :  { %v1394_v30 = vsel %vm386_vm3, %v2012_v63, %v1392_v28 }
 0x59d   :  { %v1395_v32 = vsel %vm35_vm0, %v1394_v30, 0.0 }
 0x59e   :  { %v1409_v39 = vsel %vm508_vm8, %v1395_v32, %v1404_v34 }
 0x65d   :  { %v1661_v4 = vpop.f32.mrb[18].mxu0 }
 0x65e   :  { %v1294_v14 = vadd.f32 %v1661_v4, %v1478_v55  ;;  %v1288_v15 = vpop.f32.mrb[19].mxu0 }
 0x65f   :  { %v1289_v17 = vadd.f32 %v1478_v55, %v1288_v15 }
 0x660   :  { %v1302_v18 = vmul.f32 %v1481_v48, %v1294_v14 }
 0x661   :  { %v1301_v19 = vmul.f32 %v1481_v48, %v1289_v17 }
 0x662   :  { %v1308_v20 = vadd.f32 %v1482_v16, %v1302_v18 }
 0x663   :  { %v1307_v21 = vadd.f32 %v1482_v16, %v1301_v19 }
 0x664   :  { %v1310_v23 = vmax.f32 %v1308_v20, 0.0 }
 0x665   :  { %v1309_v24 = vmax.f32 %v1307_v21, 0.0 }
 0x667   :  { %v1722_v25 = vpack.c.bf16 %v1310_v23, %v1309_v24 }
 0x669   :  { %1724 = vmatpush3.bf16.xpose.msk.msra.mxu1 %vm1931_vm13, %v1722_v25 }
 0x670   :  { %1667 = vmatmul.mubr.msk.f32.vlgmr.msra.gmra.mrb[18].mxu1 %vm613_vm12, %v1456_v26 }
 0x743   :  { %v1386_v42 = vpop.f32.mrb[18].mxu1 }
 0x744   :  { %v1402_v36 = vsel %vm706_vm6, %v1386_v42, 0.0  ;;  %v1668_v37 = vpop.f32.mrb[19].mxu1 }
 0x745   :  { %v1407_v38 = vrot.slane %v1402_v36, 3 }
 0x747   :  { %v1410_v40 = vsel %vm715_vm15, %v1409_v39, %v1407_v38 }
 0x748   :  { %v1411_v41 = vsel %vm510_vm9, %v1410_v40, 0.0 }
 0x749   :  { %1486 = vst [vmem:[%s2089_s3 + $0x8] sm:$0xff] %v1411_v41 }

</bundles_post_ra>
